<compile_context>
chip_gen: v5e
topology: v5e:2x2
jax: 0.10.0
libtpu: 0.0.40
codegen_flags: <defaults>
</compile_context>

<pallas_src>
import functools

import jax
import jax.numpy as jnp
from jax.experimental import pallas as pl
from jax.experimental.pallas import tpu as pltpu


def _dynamic_kernel_body(x_ref, w_ref, b_ref, out_ref, xpad_ref, *, k, H, W):
    # x_ref:    (Bt, H, W)      VMEM  unpadded input block
    # w_ref:    (k*k*k*k,)      SMEM  flattened Conv2d weight [c, kh, kw]
    # b_ref:    (k*k,)          SMEM  Conv2d bias
    # out_ref:  (Bt, H, W)      VMEM  output block (crop already folded in)
    # xpad_ref: (Bt, H+k-1, W+k-1) VMEM scratch  x padded by k//2 each side
    pad = k // 2

    # Build the zero-padded image in VMEM (no HBM round trip for padding).
    xpad_ref[...] = jnp.zeros_like(xpad_ref)
    xpad_ref[:, pad:pad + H, pad:pad + W] = x_ref[...].astype(jnp.float32)

    # Hoist the k*k shifted windows: each misaligned slice is formed exactly
    # once and reused by every output channel AND as the shifted multiplicand.
    taps = [[xpad_ref[:, dy:dy + H, dx:dx + W] for dx in range(k)]
            for dy in range(k)]

    acc = jnp.zeros(out_ref.shape, jnp.float32)
    for i in range(k):          # horizontal shift index (W axis)
        for j in range(k):      # vertical   shift index (H axis)
            c = k * i + j
            # firstConv channel c, already cropped to (Bt, H, W).
            conv = jnp.full(out_ref.shape, b_ref[c], dtype=jnp.float32)
            for dy in range(k):
                for dx in range(k):
                    conv = conv + w_ref[c * k * k + dy * k + dx] * taps[dy][dx]
            # tanh stays in f32 to match the reference bit-for-bit; on v6e/v7x a
            # bf16 tanh would double EUP throughput if it ever becomes binding.
            acc = acc + taps[j][i] * jnp.tanh(conv)
    out_ref[...] = acc


def _pick_batch_block(B):
    """Largest Bt<=8 dividing B that still leaves >=2 grid steps (megacore/2-TC)."""
    bt = 1
    for d in range(2, min(B, 8) + 1):
        if B % d == 0 and B // d >= 2:
            bt = d
    return bt


def dynamic_kernel_forward(x, weight, bias, k):
    """x: (B, 1, H, W) f32, weight: (k*k, 1, k, k) f32, bias: (k*k,) f32."""
    B, C, H, W = x.shape
    assert C == 1 and H == W
    assert k % 2 == 1, "DynamicKernel only shape-checks for odd kernel sizes"
    S = H + k - 1                # padded tile size == module's pre-crop img_size
    out_h = H                    # post-crop size for odd k

    bt = _pick_batch_block(B)

    x2d = x[:, 0].astype(jnp.float32)                 # (B, H, W)  -- no HBM pad copy
    w_flat = weight.reshape(-1).astype(jnp.float32)   # (k^4,)
    b_flat = bias.astype(jnp.float32)                 # (k^2,)

    kernel = functools.partial(_dynamic_kernel_body, k=k, H=H, W=W)
    out = pl.pallas_call(
        kernel,
        out_shape=jax.ShapeDtypeStruct((B, out_h, out_h), jnp.float32),
        grid=(B // bt,),
        in_specs=[
            pl.BlockSpec((bt, H, W), lambda b: (b, 0, 0)),
            pl.BlockSpec(memory_space=pltpu.MemorySpace.SMEM),
            pl.BlockSpec(memory_space=pltpu.MemorySpace.SMEM),
        ],
        out_specs=pl.BlockSpec((bt, out_h, out_h), lambda b: (b, 0, 0)),
        scratch_shapes=[pltpu.VMEM((bt, S, S), jnp.float32)],
        compiler_params=pltpu.CompilerParams(
            dimension_semantics=("parallel",)),
    )(x2d, w_flat, b_flat)
    return out[:, None, :, :]    # back to NCHW


def dynamic_kernel_reference(x, weight, bias, k):
    """Pure-JAX reference (same math, no Pallas) for a correctness smoke test."""
    B, _, H, _ = x.shape
    pad = k // 2
    S = H + k - 1
    xpad = jnp.pad(x[:, 0], ((0, 0), (k - 1, k - 1), (k - 1, k - 1)))
    out = jnp.zeros((B, S, S), jnp.float32)
    for i in range(k):
        for j in range(k):
            c = k * i + j
            conv = jnp.full((B, S, S), bias[c], dtype=jnp.float32)
            for dy in range(k):
                for dx in range(k):
                    conv = conv + weight[c, 0, dy, dx] * xpad[:, dy:dy + S, dx:dx + S]
            out = out + xpad[:, j:j + S, i:i + S] * jnp.tanh(conv)
    return out[:, None, pad:S - pad, pad:S - pad]


if __name__ == "__main__":
    k_size = 3
    batch, img = 2, 16

    key = jax.random.PRNGKey(0)
    kx, kw, kb = jax.random.split(key, 3)
    x = jax.random.normal(kx, (batch, 1, img, img), dtype=jnp.float32)
    # Deterministic synthetic init for nn.Conv2d(1, k*k, k) parameters.
    weight = 0.1 * jax.random.normal(kw, (k_size * k_size, 1, k_size, k_size),
                                     dtype=jnp.float32)
    bias = 0.1 * jax.random.normal(kb, (k_size * k_size,), dtype=jnp.float32)

    out = dynamic_kernel_forward(x, weight, bias, k_size)
    out = jax.block_until_ready(out)

    ref = dynamic_kernel_reference(x, weight, bias, k_size)
    assert out.shape == (batch, 1, img, img), out.shape
    assert jnp.allclose(out, ref, atol=1e-5, rtol=1e-5), "mismatch vs JAX reference"
    print("KERNEL_OK")
</pallas_src>

<mosaic_0001>
module attributes {stable_mosaic.version = 11 : i64} {
  func.func @_dynamic_kernel_body(%arg0: i32, %arg1: memref<1x16x16xf32, #tpu.memory_space<vmem>>, %arg2: memref<81xf32, #tpu.memory_space<smem>>, %arg3: memref<9xf32, #tpu.memory_space<smem>>, %arg4: memref<1x16x16xf32, #tpu.memory_space<vmem>>, %arg5: memref<1x18x18xf32, #tpu.memory_space<vmem>>) attributes {dimension_semantics = [#tpu.dimension_semantics<parallel>], iteration_bounds = array<i64: 2>, scalar_prefetch = 0 : i64, scratch_operands = 1 : i64, tpu.core_type = #tpu.core_type<tc>, window_params = [{transform_indices = @transform_0, window_bounds = array<i64: 1, 16, 16>}, {transform_indices = @transform_1, window_bounds = array<i64: 81>}, {transform_indices = @transform_2, window_bounds = array<i64: 9>}, {transform_indices = @transform_3, window_bounds = array<i64: 1, 16, 16>}]} {
    %cst = arith.constant 0.000000e+00 : f32
    %0 = vector.broadcast %cst : f32 to vector<1x18x18xf32>
    %c0 = arith.constant 0 : index
    %c0_0 = arith.constant 0 : index
    %c0_1 = arith.constant 0 : index
    %1 = vector.load %arg5[%c0, %c0_0, %c0_1] : memref<1x18x18xf32, #tpu.memory_space<vmem>>, vector<1x18x18xf32>
    tpu.vector_store %arg5[%c0, %c0_0, %c0_1], %0 {strides = array<i32>} : memref<1x18x18xf32, #tpu.memory_space<vmem>>, vector<1x18x18xf32>,
    %c0_2 = arith.constant 0 : index
    %c0_3 = arith.constant 0 : index
    %c0_4 = arith.constant 0 : index
    %2 = vector.load %arg1[%c0_2, %c0_3, %c0_4] : memref<1x16x16xf32, #tpu.memory_space<vmem>>, vector<1x16x16xf32>
    %c0_5 = arith.constant 0 : index
    %c1 = arith.constant 1 : index
    %c1_6 = arith.constant 1 : index
    %3 = vector.load %arg5[%c0_5, %c1, %c1_6] : memref<1x18x18xf32, #tpu.memory_space<vmem>>, vector<1x16x16xf32>
    tpu.vector_store %arg5[%c0_5, %c1, %c1_6], %2 {strides = array<i32>} : memref<1x18x18xf32, #tpu.memory_space<vmem>>, vector<1x16x16xf32>,
    %c0_7 = arith.constant 0 : index
    %c0_8 = arith.constant 0 : index
    %c0_9 = arith.constant 0 : index
    %4 = vector.load %arg5[%c0_7, %c0_8, %c0_9] : memref<1x18x18xf32, #tpu.memory_space<vmem>>, vector<1x16x16xf32>
    %c0_10 = arith.constant 0 : index
    %c0_11 = arith.constant 0 : index
    %c1_12 = arith.constant 1 : index
    %5 = vector.load %arg5[%c0_10, %c0_11, %c1_12] : memref<1x18x18xf32, #tpu.memory_space<vmem>>, vector<1x16x16xf32>
    %c0_13 = arith.constant 0 : index
    %c0_14 = arith.constant 0 : index
    %c2 = arith.constant 2 : index
    %6 = vector.load %arg5[%c0_13, %c0_14, %c2] : memref<1x18x18xf32, #tpu.memory_space<vmem>>, vector<1x16x16xf32>
    %c0_15 = arith.constant 0 : index
    %c1_16 = arith.constant 1 : index
    %c0_17 = arith.constant 0 : index
    %7 = vector.load %arg5[%c0_15, %c1_16, %c0_17] : memref<1x18x18xf32, #tpu.memory_space<vmem>>, vector<1x16x16xf32>
    %c0_18 = arith.constant 0 : index
    %c1_19 = arith.constant 1 : index
    %c1_20 = arith.constant 1 : index
    %8 = vector.load %arg5[%c0_18, %c1_19, %c1_20] : memref<1x18x18xf32, #tpu.memory_space<vmem>>, vector<1x16x16xf32>
    %c0_21 = arith.constant 0 : index
    %c1_22 = arith.constant 1 : index
    %c2_23 = arith.constant 2 : index
    %9 = vector.load %arg5[%c0_21, %c1_22, %c2_23] : memref<1x18x18xf32, #tpu.memory_space<vmem>>, vector<1x16x16xf32>
    %c0_24 = arith.constant 0 : index
    %c2_25 = arith.constant 2 : index
    %c0_26 = arith.constant 0 : index
    %10 = vector.load %arg5[%c0_24, %c2_25, %c0_26] : memref<1x18x18xf32, #tpu.memory_space<vmem>>, vector<1x16x16xf32>
    %c0_27 = arith.constant 0 : index
    %c2_28 = arith.constant 2 : index
    %c1_29 = arith.constant 1 : index
    %11 = vector.load %arg5[%c0_27, %c2_28, %c1_29] : memref<1x18x18xf32, #tpu.memory_space<vmem>>, vector<1x16x16xf32>
    %c0_30 = arith.constant 0 : index
    %c2_31 = arith.constant 2 : index
    %c2_32 = arith.constant 2 : index
    %12 = vector.load %arg5[%c0_30, %c2_31, %c2_32] : memref<1x18x18xf32, #tpu.memory_space<vmem>>, vector<1x16x16xf32>
    %cst_33 = arith.constant 0.000000e+00 : f32
    %13 = vector.broadcast %cst_33 : f32 to vector<1x16x16xf32>
    %c0_34 = arith.constant 0 : index
    %14 = memref.load %arg3[%c0_34] : memref<9xf32, #tpu.memory_space<smem>>
    %15 = vector.broadcast %14 : f32 to vector<1x16x16xf32>
    %c0_35 = arith.constant 0 : index
    %16 = memref.load %arg2[%c0_35] : memref<81xf32, #tpu.memory_space<smem>>
    %17 = vector.broadcast %16 : f32 to vector<1x16x16xf32>
    %18 = arith.mulf %17, %4 : vector<1x16x16xf32>
    %19 = arith.addf %15, %18 : vector<1x16x16xf32>
    %c1_36 = arith.constant 1 : index
    %20 = memref.load %arg2[%c1_36] : memref<81xf32, #tpu.memory_space<smem>>
    %21 = vector.broadcast %20 : f32 to vector<1x16x16xf32>
    %22 = arith.mulf %21, %5 : vector<1x16x16xf32>
    %23 = arith.addf %19, %22 : vector<1x16x16xf32>
    %c2_37 = arith.constant 2 : index
    %24 = memref.load %arg2[%c2_37] : memref<81xf32, #tpu.memory_space<smem>>
    %25 = vector.broadcast %24 : f32 to vector<1x16x16xf32>
    %26 = arith.mulf %25, %6 : vector<1x16x16xf32>
    %27 = arith.addf %23, %26 : vector<1x16x16xf32>
    %c3 = arith.constant 3 : index
    %28 = memref.load %arg2[%c3] : memref<81xf32, #tpu.memory_space<smem>>
    %29 = vector.broadcast %28 : f32 to vector<1x16x16xf32>
    %30 = arith.mulf %29, %7 : vector<1x16x16xf32>
    %31 = arith.addf %27, %30 : vector<1x16x16xf32>
    %c4 = arith.constant 4 : index
    %32 = memref.load %arg2[%c4] : memref<81xf32, #tpu.memory_space<smem>>
    %33 = vector.broadcast %32 : f32 to vector<1x16x16xf32>
    %34 = arith.mulf %33, %8 : vector<1x16x16xf32>
    %35 = arith.addf %31, %34 : vector<1x16x16xf32>
    %c5 = arith.constant 5 : index
    %36 = memref.load %arg2[%c5] : memref<81xf32, #tpu.memory_space<smem>>
    %37 = vector.broadcast %36 : f32 to vector<1x16x16xf32>
    %38 = arith.mulf %37, %9 : vector<1x16x16xf32>
    %39 = arith.addf %35, %38 : vector<1x16x16xf32>
    %c6 = arith.constant 6 : index
    %40 = memref.load %arg2[%c6] : memref<81xf32, #tpu.memory_space<smem>>
    %41 = vector.broadcast %40 : f32 to vector<1x16x16xf32>
    %42 = arith.mulf %41, %10 : vector<1x16x16xf32>
    %43 = arith.addf %39, %42 : vector<1x16x16xf32>
    %c7 = arith.constant 7 : index
    %44 = memref.load %arg2[%c7] : memref<81xf32, #tpu.memory_space<smem>>
    %45 = vector.broadcast %44 : f32 to vector<1x16x16xf32>
    %46 = arith.mulf %45, %11 : vector<1x16x16xf32>
    %47 = arith.addf %43, %46 : vector<1x16x16xf32>
    %c8 = arith.constant 8 : index
    %48 = memref.load %arg2[%c8] : memref<81xf32, #tpu.memory_space<smem>>
    %49 = vector.broadcast %48 : f32 to vector<1x16x16xf32>
    %50 = arith.mulf %49, %12 : vector<1x16x16xf32>
    %51 = arith.addf %47, %50 : vector<1x16x16xf32>
    %52 = math.tanh %51 : vector<1x16x16xf32>
    %53 = arith.mulf %4, %52 : vector<1x16x16xf32>
    %54 = arith.addf %13, %53 : vector<1x16x16xf32>
    %c1_38 = arith.constant 1 : index
    %55 = memref.load %arg3[%c1_38] : memref<9xf32, #tpu.memory_space<smem>>
    %56 = vector.broadcast %55 : f32 to vector<1x16x16xf32>
    %c9 = arith.constant 9 : index
    %57 = memref.load %arg2[%c9] : memref<81xf32, #tpu.memory_space<smem>>
    %58 = vector.broadcast %57 : f32 to vector<1x16x16xf32>
    %59 = arith.mulf %58, %4 : vector<1x16x16xf32>
    %60 = arith.addf %56, %59 : vector<1x16x16xf32>
    %c10 = arith.constant 10 : index
    %61 = memref.load %arg2[%c10] : memref<81xf32, #tpu.memory_space<smem>>
    %62 = vector.broadcast %61 : f32 to vector<1x16x16xf32>
    %63 = arith.mulf %62, %5 : vector<1x16x16xf32>
    %64 = arith.addf %60, %63 : vector<1x16x16xf32>
    %c11 = arith.constant 11 : index
    %65 = memref.load %arg2[%c11] : memref<81xf32, #tpu.memory_space<smem>>
    %66 = vector.broadcast %65 : f32 to vector<1x16x16xf32>
    %67 = arith.mulf %66, %6 : vector<1x16x16xf32>
    %68 = arith.addf %64, %67 : vector<1x16x16xf32>
    %c12 = arith.constant 12 : index
    %69 = memref.load %arg2[%c12] : memref<81xf32, #tpu.memory_space<smem>>
    %70 = vector.broadcast %69 : f32 to vector<1x16x16xf32>
    %71 = arith.mulf %70, %7 : vector<1x16x16xf32>
    %72 = arith.addf %68, %71 : vector<1x16x16xf32>
    %c13 = arith.constant 13 : index
    %73 = memref.load %arg2[%c13] : memref<81xf32, #tpu.memory_space<smem>>
    %74 = vector.broadcast %73 : f32 to vector<1x16x16xf32>
    %75 = arith.mulf %74, %8 : vector<1x16x16xf32>
    %76 = arith.addf %72, %75 : vector<1x16x16xf32>
    %c14 = arith.constant 14 : index
    %77 = memref.load %arg2[%c14] : memref<81xf32, #tpu.memory_space<smem>>
    %78 = vector.broadcast %77 : f32 to vector<1x16x16xf32>
    %79 = arith.mulf %78, %9 : vector<1x16x16xf32>
    %80 = arith.addf %76, %79 : vector<1x16x16xf32>
    %c15 = arith.constant 15 : index
    %81 = memref.load %arg2[%c15] : memref<81xf32, #tpu.memory_space<smem>>
    %82 = vector.broadcast %81 : f32 to vector<1x16x16xf32>
    %83 = arith.mulf %82, %10 : vector<1x16x16xf32>
    %84 = arith.addf %80, %83 : vector<1x16x16xf32>
    %c16 = arith.constant 16 : index
    %85 = memref.load %arg2[%c16] : memref<81xf32, #tpu.memory_space<smem>>
    %86 = vector.broadcast %85 : f32 to vector<1x16x16xf32>
    %87 = arith.mulf %86, %11 : vector<1x16x16xf32>
    %88 = arith.addf %84, %87 : vector<1x16x16xf32>
    %c17 = arith.constant 17 : index
    %89 = memref.load %arg2[%c17] : memref<81xf32, #tpu.memory_space<smem>>
    %90 = vector.broadcast %89 : f32 to vector<1x16x16xf32>
    %91 = arith.mulf %90, %12 : vector<1x16x16xf32>
    %92 = arith.addf %88, %91 : vector<1x16x16xf32>
    %93 = math.tanh %92 : vector<1x16x16xf32>
    %94 = arith.mulf %7, %93 : vector<1x16x16xf32>
    %95 = arith.addf %54, %94 : vector<1x16x16xf32>
    %c2_39 = arith.constant 2 : index
    %96 = memref.load %arg3[%c2_39] : memref<9xf32, #tpu.memory_space<smem>>
    %97 = vector.broadcast %96 : f32 to vector<1x16x16xf32>
    %c18 = arith.constant 18 : index
    %98 = memref.load %arg2[%c18] : memref<81xf32, #tpu.memory_space<smem>>
    %99 = vector.broadcast %98 : f32 to vector<1x16x16xf32>
    %100 = arith.mulf %99, %4 : vector<1x16x16xf32>
    %101 = arith.addf %97, %100 : vector<1x16x16xf32>
    %c19 = arith.constant 19 : index
    %102 = memref.load %arg2[%c19] : memref<81xf32, #tpu.memory_space<smem>>
    %103 = vector.broadcast %102 : f32 to vector<1x16x16xf32>
    %104 = arith.mulf %103, %5 : vector<1x16x16xf32>
    %105 = arith.addf %101, %104 : vector<1x16x16xf32>
    %c20 = arith.constant 20 : index
    %106 = memref.load %arg2[%c20] : memref<81xf32, #tpu.memory_space<smem>>
    %107 = vector.broadcast %106 : f32 to vector<1x16x16xf32>
    %108 = arith.mulf %107, %6 : vector<1x16x16xf32>
    %109 = arith.addf %105, %108 : vector<1x16x16xf32>
    %c21 = arith.constant 21 : index
    %110 = memref.load %arg2[%c21] : memref<81xf32, #tpu.memory_space<smem>>
    %111 = vector.broadcast %110 : f32 to vector<1x16x16xf32>
    %112 = arith.mulf %111, %7 : vector<1x16x16xf32>
    %113 = arith.addf %109, %112 : vector<1x16x16xf32>
    %c22 = arith.constant 22 : index
    %114 = memref.load %arg2[%c22] : memref<81xf32, #tpu.memory_space<smem>>
    %115 = vector.broadcast %114 : f32 to vector<1x16x16xf32>
    %116 = arith.mulf %115, %8 : vector<1x16x16xf32>
    %117 = arith.addf %113, %116 : vector<1x16x16xf32>
    %c23 = arith.constant 23 : index
    %118 = memref.load %arg2[%c23] : memref<81xf32, #tpu.memory_space<smem>>
    %119 = vector.broadcast %118 : f32 to vector<1x16x16xf32>
    %120 = arith.mulf %119, %9 : vector<1x16x16xf32>
    %121 = arith.addf %117, %120 : vector<1x16x16xf32>
    %c24 = arith.constant 24 : index
    %122 = memref.load %arg2[%c24] : memref<81xf32, #tpu.memory_space<smem>>
    %123 = vector.broadcast %122 : f32 to vector<1x16x16xf32>
    %124 = arith.mulf %123, %10 : vector<1x16x16xf32>
    %125 = arith.addf %121, %124 : vector<1x16x16xf32>
    %c25 = arith.constant 25 : index
    %126 = memref.load %arg2[%c25] : memref<81xf32, #tpu.memory_space<smem>>
    %127 = vector.broadcast %126 : f32 to vector<1x16x16xf32>
    %128 = arith.mulf %127, %11 : vector<1x16x16xf32>
    %129 = arith.addf %125, %128 : vector<1x16x16xf32>
    %c26 = arith.constant 26 : index
    %130 = memref.load %arg2[%c26] : memref<81xf32, #tpu.memory_space<smem>>
    %131 = vector.broadcast %130 : f32 to vector<1x16x16xf32>
    %132 = arith.mulf %131, %12 : vector<1x16x16xf32>
    %133 = arith.addf %129, %132 : vector<1x16x16xf32>
    %134 = math.tanh %133 : vector<1x16x16xf32>
    %135 = arith.mulf %10, %134 : vector<1x16x16xf32>
    %136 = arith.addf %95, %135 : vector<1x16x16xf32>
    %c3_40 = arith.constant 3 : index
    %137 = memref.load %arg3[%c3_40] : memref<9xf32, #tpu.memory_space<smem>>
    %138 = vector.broadcast %137 : f32 to vector<1x16x16xf32>
    %c27 = arith.constant 27 : index
    %139 = memref.load %arg2[%c27] : memref<81xf32, #tpu.memory_space<smem>>
    %140 = vector.broadcast %139 : f32 to vector<1x16x16xf32>
    %141 = arith.mulf %140, %4 : vector<1x16x16xf32>
    %142 = arith.addf %138, %141 : vector<1x16x16xf32>
    %c28 = arith.constant 28 : index
    %143 = memref.load %arg2[%c28] : memref<81xf32, #tpu.memory_space<smem>>
    %144 = vector.broadcast %143 : f32 to vector<1x16x16xf32>
    %145 = arith.mulf %144, %5 : vector<1x16x16xf32>
    %146 = arith.addf %142, %145 : vector<1x16x16xf32>
    %c29 = arith.constant 29 : index
    %147 = memref.load %arg2[%c29] : memref<81xf32, #tpu.memory_space<smem>>
    %148 = vector.broadcast %147 : f32 to vector<1x16x16xf32>
    %149 = arith.mulf %148, %6 : vector<1x16x16xf32>
    %150 = arith.addf %146, %149 : vector<1x16x16xf32>
    %c30 = arith.constant 30 : index
    %151 = memref.load %arg2[%c30] : memref<81xf32, #tpu.memory_space<smem>>
    %152 = vector.broadcast %151 : f32 to vector<1x16x16xf32>
    %153 = arith.mulf %152, %7 : vector<1x16x16xf32>
    %154 = arith.addf %150, %153 : vector<1x16x16xf32>
    %c31 = arith.constant 31 : index
    %155 = memref.load %arg2[%c31] : memref<81xf32, #tpu.memory_space<smem>>
    %156 = vector.broadcast %155 : f32 to vector<1x16x16xf32>
    %157 = arith.mulf %156, %8 : vector<1x16x16xf32>
    %158 = arith.addf %154, %157 : vector<1x16x16xf32>
    %c32 = arith.constant 32 : index
    %159 = memref.load %arg2[%c32] : memref<81xf32, #tpu.memory_space<smem>>
    %160 = vector.broadcast %159 : f32 to vector<1x16x16xf32>
    %161 = arith.mulf %160, %9 : vector<1x16x16xf32>
    %162 = arith.addf %158, %161 : vector<1x16x16xf32>
    %c33 = arith.constant 33 : index
    %163 = memref.load %arg2[%c33] : memref<81xf32, #tpu.memory_space<smem>>
    %164 = vector.broadcast %163 : f32 to vector<1x16x16xf32>
    %165 = arith.mulf %164, %10 : vector<1x16x16xf32>
    %166 = arith.addf %162, %165 : vector<1x16x16xf32>
    %c34 = arith.constant 34 : index
    %167 = memref.load %arg2[%c34] : memref<81xf32, #tpu.memory_space<smem>>
    %168 = vector.broadcast %167 : f32 to vector<1x16x16xf32>
    %169 = arith.mulf %168, %11 : vector<1x16x16xf32>
    %170 = arith.addf %166, %169 : vector<1x16x16xf32>
    %c35 = arith.constant 35 : index
    %171 = memref.load %arg2[%c35] : memref<81xf32, #tpu.memory_space<smem>>
    %172 = vector.broadcast %171 : f32 to vector<1x16x16xf32>
    %173 = arith.mulf %172, %12 : vector<1x16x16xf32>
    %174 = arith.addf %170, %173 : vector<1x16x16xf32>
    %175 = math.tanh %174 : vector<1x16x16xf32>
    %176 = arith.mulf %5, %175 : vector<1x16x16xf32>
    %177 = arith.addf %136, %176 : vector<1x16x16xf32>
    %c4_41 = arith.constant 4 : index
    %178 = memref.load %arg3[%c4_41] : memref<9xf32, #tpu.memory_space<smem>>
    %179 = vector.broadcast %178 : f32 to vector<1x16x16xf32>
    %c36 = arith.constant 36 : index
    %180 = memref.load %arg2[%c36] : memref<81xf32, #tpu.memory_space<smem>>
    %181 = vector.broadcast %180 : f32 to vector<1x16x16xf32>
    %182 = arith.mulf %181, %4 : vector<1x16x16xf32>
    %183 = arith.addf %179, %182 : vector<1x16x16xf32>
    %c37 = arith.constant 37 : index
    %184 = memref.load %arg2[%c37] : memref<81xf32, #tpu.memory_space<smem>>
    %185 = vector.broadcast %184 : f32 to vector<1x16x16xf32>
    %186 = arith.mulf %185, %5 : vector<1x16x16xf32>
    %187 = arith.addf %183, %186 : vector<1x16x16xf32>
    %c38 = arith.constant 38 : index
    %188 = memref.load %arg2[%c38] : memref<81xf32, #tpu.memory_space<smem>>
    %189 = vector.broadcast %188 : f32 to vector<1x16x16xf32>
    %190 = arith.mulf %189, %6 : vector<1x16x16xf32>
    %191 = arith.addf %187, %190 : vector<1x16x16xf32>
    %c39 = arith.constant 39 : index
    %192 = memref.load %arg2[%c39] : memref<81xf32, #tpu.memory_space<smem>>
    %193 = vector.broadcast %192 : f32 to vector<1x16x16xf32>
    %194 = arith.mulf %193, %7 : vector<1x16x16xf32>
    %195 = arith.addf %191, %194 : vector<1x16x16xf32>
    %c40 = arith.constant 40 : index
    %196 = memref.load %arg2[%c40] : memref<81xf32, #tpu.memory_space<smem>>
    %197 = vector.broadcast %196 : f32 to vector<1x16x16xf32>
    %198 = arith.mulf %197, %8 : vector<1x16x16xf32>
    %199 = arith.addf %195, %198 : vector<1x16x16xf32>
    %c41 = arith.constant 41 : index
    %200 = memref.load %arg2[%c41] : memref<81xf32, #tpu.memory_space<smem>>
    %201 = vector.broadcast %200 : f32 to vector<1x16x16xf32>
    %202 = arith.mulf %201, %9 : vector<1x16x16xf32>
    %203 = arith.addf %199, %202 : vector<1x16x16xf32>
    %c42 = arith.constant 42 : index
    %204 = memref.load %arg2[%c42] : memref<81xf32, #tpu.memory_space<smem>>
    %205 = vector.broadcast %204 : f32 to vector<1x16x16xf32>
    %206 = arith.mulf %205, %10 : vector<1x16x16xf32>
    %207 = arith.addf %203, %206 : vector<1x16x16xf32>
    %c43 = arith.constant 43 : index
    %208 = memref.load %arg2[%c43] : memref<81xf32, #tpu.memory_space<smem>>
    %209 = vector.broadcast %208 : f32 to vector<1x16x16xf32>
    %210 = arith.mulf %209, %11 : vector<1x16x16xf32>
    %211 = arith.addf %207, %210 : vector<1x16x16xf32>
    %c44 = arith.constant 44 : index
    %212 = memref.load %arg2[%c44] : memref<81xf32, #tpu.memory_space<smem>>
    %213 = vector.broadcast %212 : f32 to vector<1x16x16xf32>
    %214 = arith.mulf %213, %12 : vector<1x16x16xf32>
    %215 = arith.addf %211, %214 : vector<1x16x16xf32>
    %216 = math.tanh %215 : vector<1x16x16xf32>
    %217 = arith.mulf %8, %216 : vector<1x16x16xf32>
    %218 = arith.addf %177, %217 : vector<1x16x16xf32>
    %c5_42 = arith.constant 5 : index
    %219 = memref.load %arg3[%c5_42] : memref<9xf32, #tpu.memory_space<smem>>
    %220 = vector.broadcast %219 : f32 to vector<1x16x16xf32>
    %c45 = arith.constant 45 : index
    %221 = memref.load %arg2[%c45] : memref<81xf32, #tpu.memory_space<smem>>
    %222 = vector.broadcast %221 : f32 to vector<1x16x16xf32>
    %223 = arith.mulf %222, %4 : vector<1x16x16xf32>
    %224 = arith.addf %220, %223 : vector<1x16x16xf32>
    %c46 = arith.constant 46 : index
    %225 = memref.load %arg2[%c46] : memref<81xf32, #tpu.memory_space<smem>>
    %226 = vector.broadcast %225 : f32 to vector<1x16x16xf32>
    %227 = arith.mulf %226, %5 : vector<1x16x16xf32>
    %228 = arith.addf %224, %227 : vector<1x16x16xf32>
    %c47 = arith.constant 47 : index
    %229 = memref.load %arg2[%c47] : memref<81xf32, #tpu.memory_space<smem>>
    %230 = vector.broadcast %229 : f32 to vector<1x16x16xf32>
    %231 = arith.mulf %230, %6 : vector<1x16x16xf32>
    %232 = arith.addf %228, %231 : vector<1x16x16xf32>
    %c48 = arith.constant 48 : index
    %233 = memref.load %arg2[%c48] : memref<81xf32, #tpu.memory_space<smem>>
    %234 = vector.broadcast %233 : f32 to vector<1x16x16xf32>
    %235 = arith.mulf %234, %7 : vector<1x16x16xf32>
    %236 = arith.addf %232, %235 : vector<1x16x16xf32>
    %c49 = arith.constant 49 : index
    %237 = memref.load %arg2[%c49] : memref<81xf32, #tpu.memory_space<smem>>
    %238 = vector.broadcast %237 : f32 to vector<1x16x16xf32>
    %239 = arith.mulf %238, %8 : vector<1x16x16xf32>
    %240 = arith.addf %236, %239 : vector<1x16x16xf32>
    %c50 = arith.constant 50 : index
    %241 = memref.load %arg2[%c50] : memref<81xf32, #tpu.memory_space<smem>>
    %242 = vector.broadcast %241 : f32 to vector<1x16x16xf32>
    %243 = arith.mulf %242, %9 : vector<1x16x16xf32>
    %244 = arith.addf %240, %243 : vector<1x16x16xf32>
    %c51 = arith.constant 51 : index
    %245 = memref.load %arg2[%c51] : memref<81xf32, #tpu.memory_space<smem>>
    %246 = vector.broadcast %245 : f32 to vector<1x16x16xf32>
    %247 = arith.mulf %246, %10 : vector<1x16x16xf32>
    %248 = arith.addf %244, %247 : vector<1x16x16xf32>
    %c52 = arith.constant 52 : index
    %249 = memref.load %arg2[%c52] : memref<81xf32, #tpu.memory_space<smem>>
    %250 = vector.broadcast %249 : f32 to vector<1x16x16xf32>
    %251 = arith.mulf %250, %11 : vector<1x16x16xf32>
    %252 = arith.addf %248, %251 : vector<1x16x16xf32>
    %c53 = arith.constant 53 : index
    %253 = memref.load %arg2[%c53] : memref<81xf32, #tpu.memory_space<smem>>
    %254 = vector.broadcast %253 : f32 to vector<1x16x16xf32>
    %255 = arith.mulf %254, %12 : vector<1x16x16xf32>
    %256 = arith.addf %252, %255 : vector<1x16x16xf32>
    %257 = math.tanh %256 : vector<1x16x16xf32>
    %258 = arith.mulf %11, %257 : vector<1x16x16xf32>
    %259 = arith.addf %218, %258 : vector<1x16x16xf32>
    %c6_43 = arith.constant 6 : index
    %260 = memref.load %arg3[%c6_43] : memref<9xf32, #tpu.memory_space<smem>>
    %261 = vector.broadcast %260 : f32 to vector<1x16x16xf32>
    %c54 = arith.constant 54 : index
    %262 = memref.load %arg2[%c54] : memref<81xf32, #tpu.memory_space<smem>>
    %263 = vector.broadcast %262 : f32 to vector<1x16x16xf32>
    %264 = arith.mulf %263, %4 : vector<1x16x16xf32>
    %265 = arith.addf %261, %264 : vector<1x16x16xf32>
    %c55 = arith.constant 55 : index
    %266 = memref.load %arg2[%c55] : memref<81xf32, #tpu.memory_space<smem>>
    %267 = vector.broadcast %266 : f32 to vector<1x16x16xf32>
    %268 = arith.mulf %267, %5 : vector<1x16x16xf32>
    %269 = arith.addf %265, %268 : vector<1x16x16xf32>
    %c56 = arith.constant 56 : index
    %270 = memref.load %arg2[%c56] : memref<81xf32, #tpu.memory_space<smem>>
    %271 = vector.broadcast %270 : f32 to vector<1x16x16xf32>
    %272 = arith.mulf %271, %6 : vector<1x16x16xf32>
    %273 = arith.addf %269, %272 : vector<1x16x16xf32>
    %c57 = arith.constant 57 : index
    %274 = memref.load %arg2[%c57] : memref<81xf32, #tpu.memory_space<smem>>
    %275 = vector.broadcast %274 : f32 to vector<1x16x16xf32>
    %276 = arith.mulf %275, %7 : vector<1x16x16xf32>
    %277 = arith.addf %273, %276 : vector<1x16x16xf32>
    %c58 = arith.constant 58 : index
    %278 = memref.load %arg2[%c58] : memref<81xf32, #tpu.memory_space<smem>>
    %279 = vector.broadcast %278 : f32 to vector<1x16x16xf32>
    %280 = arith.mulf %279, %8 : vector<1x16x16xf32>
    %281 = arith.addf %277, %280 : vector<1x16x16xf32>
    %c59 = arith.constant 59 : index
    %282 = memref.load %arg2[%c59] : memref<81xf32, #tpu.memory_space<smem>>
    %283 = vector.broadcast %282 : f32 to vector<1x16x16xf32>
    %284 = arith.mulf %283, %9 : vector<1x16x16xf32>
    %285 = arith.addf %281, %284 : vector<1x16x16xf32>
    %c60 = arith.constant 60 : index
    %286 = memref.load %arg2[%c60] : memref<81xf32, #tpu.memory_space<smem>>
    %287 = vector.broadcast %286 : f32 to vector<1x16x16xf32>
    %288 = arith.mulf %287, %10 : vector<1x16x16xf32>
    %289 = arith.addf %285, %288 : vector<1x16x16xf32>
    %c61 = arith.constant 61 : index
    %290 = memref.load %arg2[%c61] : memref<81xf32, #tpu.memory_space<smem>>
    %291 = vector.broadcast %290 : f32 to vector<1x16x16xf32>
    %292 = arith.mulf %291, %11 : vector<1x16x16xf32>
    %293 = arith.addf %289, %292 : vector<1x16x16xf32>
    %c62 = arith.constant 62 : index
    %294 = memref.load %arg2[%c62] : memref<81xf32, #tpu.memory_space<smem>>
    %295 = vector.broadcast %294 : f32 to vector<1x16x16xf32>
    %296 = arith.mulf %295, %12 : vector<1x16x16xf32>
    %297 = arith.addf %293, %296 : vector<1x16x16xf32>
    %298 = math.tanh %297 : vector<1x16x16xf32>
    %299 = arith.mulf %6, %298 : vector<1x16x16xf32>
    %300 = arith.addf %259, %299 : vector<1x16x16xf32>
    %c7_44 = arith.constant 7 : index
    %301 = memref.load %arg3[%c7_44] : memref<9xf32, #tpu.memory_space<smem>>
    %302 = vector.broadcast %301 : f32 to vector<1x16x16xf32>
    %c63 = arith.constant 63 : index
    %303 = memref.load %arg2[%c63] : memref<81xf32, #tpu.memory_space<smem>>
    %304 = vector.broadcast %303 : f32 to vector<1x16x16xf32>
    %305 = arith.mulf %304, %4 : vector<1x16x16xf32>
    %306 = arith.addf %302, %305 : vector<1x16x16xf32>
    %c64 = arith.constant 64 : index
    %307 = memref.load %arg2[%c64] : memref<81xf32, #tpu.memory_space<smem>>
    %308 = vector.broadcast %307 : f32 to vector<1x16x16xf32>
    %309 = arith.mulf %308, %5 : vector<1x16x16xf32>
    %310 = arith.addf %306, %309 : vector<1x16x16xf32>
    %c65 = arith.constant 65 : index
    %311 = memref.load %arg2[%c65] : memref<81xf32, #tpu.memory_space<smem>>
    %312 = vector.broadcast %311 : f32 to vector<1x16x16xf32>
    %313 = arith.mulf %312, %6 : vector<1x16x16xf32>
    %314 = arith.addf %310, %313 : vector<1x16x16xf32>
    %c66 = arith.constant 66 : index
    %315 = memref.load %arg2[%c66] : memref<81xf32, #tpu.memory_space<smem>>
    %316 = vector.broadcast %315 : f32 to vector<1x16x16xf32>
    %317 = arith.mulf %316, %7 : vector<1x16x16xf32>
    %318 = arith.addf %314, %317 : vector<1x16x16xf32>
    %c67 = arith.constant 67 : index
    %319 = memref.load %arg2[%c67] : memref<81xf32, #tpu.memory_space<smem>>
    %320 = vector.broadcast %319 : f32 to vector<1x16x16xf32>
    %321 = arith.mulf %320, %8 : vector<1x16x16xf32>
    %322 = arith.addf %318, %321 : vector<1x16x16xf32>
    %c68 = arith.constant 68 : index
    %323 = memref.load %arg2[%c68] : memref<81xf32, #tpu.memory_space<smem>>
    %324 = vector.broadcast %323 : f32 to vector<1x16x16xf32>
    %325 = arith.mulf %324, %9 : vector<1x16x16xf32>
    %326 = arith.addf %322, %325 : vector<1x16x16xf32>
    %c69 = arith.constant 69 : index
    %327 = memref.load %arg2[%c69] : memref<81xf32, #tpu.memory_space<smem>>
    %328 = vector.broadcast %327 : f32 to vector<1x16x16xf32>
    %329 = arith.mulf %328, %10 : vector<1x16x16xf32>
    %330 = arith.addf %326, %329 : vector<1x16x16xf32>
    %c70 = arith.constant 70 : index
    %331 = memref.load %arg2[%c70] : memref<81xf32, #tpu.memory_space<smem>>
    %332 = vector.broadcast %331 : f32 to vector<1x16x16xf32>
    %333 = arith.mulf %332, %11 : vector<1x16x16xf32>
    %334 = arith.addf %330, %333 : vector<1x16x16xf32>
    %c71 = arith.constant 71 : index
    %335 = memref.load %arg2[%c71] : memref<81xf32, #tpu.memory_space<smem>>
    %336 = vector.broadcast %335 : f32 to vector<1x16x16xf32>
    %337 = arith.mulf %336, %12 : vector<1x16x16xf32>
    %338 = arith.addf %334, %337 : vector<1x16x16xf32>
    %339 = math.tanh %338 : vector<1x16x16xf32>
    %340 = arith.mulf %9, %339 : vector<1x16x16xf32>
    %341 = arith.addf %300, %340 : vector<1x16x16xf32>
    %c8_45 = arith.constant 8 : index
    %342 = memref.load %arg3[%c8_45] : memref<9xf32, #tpu.memory_space<smem>>
    %343 = vector.broadcast %342 : f32 to vector<1x16x16xf32>
    %c72 = arith.constant 72 : index
    %344 = memref.load %arg2[%c72] : memref<81xf32, #tpu.memory_space<smem>>
    %345 = vector.broadcast %344 : f32 to vector<1x16x16xf32>
    %346 = arith.mulf %345, %4 : vector<1x16x16xf32>
    %347 = arith.addf %343, %346 : vector<1x16x16xf32>
    %c73 = arith.constant 73 : index
    %348 = memref.load %arg2[%c73] : memref<81xf32, #tpu.memory_space<smem>>
    %349 = vector.broadcast %348 : f32 to vector<1x16x16xf32>
    %350 = arith.mulf %349, %5 : vector<1x16x16xf32>
    %351 = arith.addf %347, %350 : vector<1x16x16xf32>
    %c74 = arith.constant 74 : index
    %352 = memref.load %arg2[%c74] : memref<81xf32, #tpu.memory_space<smem>>
    %353 = vector.broadcast %352 : f32 to vector<1x16x16xf32>
    %354 = arith.mulf %353, %6 : vector<1x16x16xf32>
    %355 = arith.addf %351, %354 : vector<1x16x16xf32>
    %c75 = arith.constant 75 : index
    %356 = memref.load %arg2[%c75] : memref<81xf32, #tpu.memory_space<smem>>
    %357 = vector.broadcast %356 : f32 to vector<1x16x16xf32>
    %358 = arith.mulf %357, %7 : vector<1x16x16xf32>
    %359 = arith.addf %355, %358 : vector<1x16x16xf32>
    %c76 = arith.constant 76 : index
    %360 = memref.load %arg2[%c76] : memref<81xf32, #tpu.memory_space<smem>>
    %361 = vector.broadcast %360 : f32 to vector<1x16x16xf32>
    %362 = arith.mulf %361, %8 : vector<1x16x16xf32>
    %363 = arith.addf %359, %362 : vector<1x16x16xf32>
    %c77 = arith.constant 77 : index
    %364 = memref.load %arg2[%c77] : memref<81xf32, #tpu.memory_space<smem>>
    %365 = vector.broadcast %364 : f32 to vector<1x16x16xf32>
    %366 = arith.mulf %365, %9 : vector<1x16x16xf32>
    %367 = arith.addf %363, %366 : vector<1x16x16xf32>
    %c78 = arith.constant 78 : index
    %368 = memref.load %arg2[%c78] : memref<81xf32, #tpu.memory_space<smem>>
    %369 = vector.broadcast %368 : f32 to vector<1x16x16xf32>
    %370 = arith.mulf %369, %10 : vector<1x16x16xf32>
    %371 = arith.addf %367, %370 : vector<1x16x16xf32>
    %c79 = arith.constant 79 : index
    %372 = memref.load %arg2[%c79] : memref<81xf32, #tpu.memory_space<smem>>
    %373 = vector.broadcast %372 : f32 to vector<1x16x16xf32>
    %374 = arith.mulf %373, %11 : vector<1x16x16xf32>
    %375 = arith.addf %371, %374 : vector<1x16x16xf32>
    %c80 = arith.constant 80 : index
    %376 = memref.load %arg2[%c80] : memref<81xf32, #tpu.memory_space<smem>>
    %377 = vector.broadcast %376 : f32 to vector<1x16x16xf32>
    %378 = arith.mulf %377, %12 : vector<1x16x16xf32>
    %379 = arith.addf %375, %378 : vector<1x16x16xf32>
    %380 = math.tanh %379 : vector<1x16x16xf32>
    %381 = arith.mulf %12, %380 : vector<1x16x16xf32>
    %382 = arith.addf %341, %381 : vector<1x16x16xf32>
    %c0_46 = arith.constant 0 : index
    %c0_47 = arith.constant 0 : index
    %c0_48 = arith.constant 0 : index
    %383 = vector.load %arg4[%c0_46, %c0_47, %c0_48] : memref<1x16x16xf32, #tpu.memory_space<vmem>>, vector<1x16x16xf32>
    tpu.vector_store %arg4[%c0_46, %c0_47, %c0_48], %382 {strides = array<i32>} : memref<1x16x16xf32, #tpu.memory_space<vmem>>, vector<1x16x16xf32>,
    return
  }
  func.func @transform_0(%arg0: i32) -> (i32, i32, i32) {
    %c0_i32 = arith.constant 0 : i32
    %c0_i32_0 = arith.constant 0 : i32
    %c0_i32_1 = arith.constant 0 : i32
    return %arg0, %c0_i32, %c0_i32_0 : i32, i32, i32
  }
  func.func @transform_1(%arg0: i32) -> i32 {
    %c0_i32 = arith.constant 0 : i32
    %c0_i32_0 = arith.constant 0 : i32
    return %c0_i32 : i32
  }
  func.func @transform_2(%arg0: i32) -> i32 {
    %c0_i32 = arith.constant 0 : i32
    %c0_i32_0 = arith.constant 0 : i32
    return %c0_i32 : i32
  }
  func.func @transform_3(%arg0: i32) -> (i32, i32, i32) {
    %c0_i32 = arith.constant 0 : i32
    %c0_i32_0 = arith.constant 0 : i32
    %c0_i32_1 = arith.constant 0 : i32
    return %arg0, %c0_i32, %c0_i32_0 : i32, i32, i32
  }
}

</mosaic_0001>

<bundles_post_ra>
// kernel: tpu_custom_call.1
= control target key start
LH: loop header
LB: loop body
LE: loop exit
PB: predicated region body
PF: predicated region fallthrough
CT: control target
= control target key end

     0   :  { %s2687_s0 = inlined_call_operand.hbm [shape: f32[2,16,16], index: 0, kind: input, shape index: {}]   ;;  %s2688_s1 = inlined_call_operand.hbm [shape: f32[81], index: 1, kind: input, shape index: {}]   ;;  %s2689_s2 = inlined_call_operand.vmem [shape: f32[9], index: 2, kind: input, shape index: {}]   ;;  %s2690_s3 = inlined_call_operand.hbm [shape: f32[2,16,16], index: 3, kind: output, shape index: {}]  }
   0x1   :  { %2691 = sst [smem:[#allocation15_spill]] %s2688_s1 }
   0x2   :  { %8 = vsyncpa [#allocation4], 0 }
   0x3   :  { %10 = vsyncpa [#allocation4 + $0x1], 0 }
   0x4   :  { %11 = vsyncpa [#allocation6], 0 }
   0x5   :  { %12 = vsyncpa [#allocation7], 0 }
   0x6   :  { %13 = vsyncpa [#allocation5], 0 }
   0x7   :  { %15 = vsyncpa [#allocation5 + $0x1], 0  ;;  %s1837_s12 = smov 0   ;;  %s1839_s13 = smov 0  }
   0x8   :  { %s1841_s14 = smov 0   ;;  %s1843_s15 = smov 0  }
   0x9 LB: > { %s1858_s16 = sadd.s32 4294967295, %s1804_s15   ;;  %s1444_s17 = sadd.s32 4294967294, %s1804_s15   ;;  %s1804_s15 = sphi %s1843_s15, %s2703_s15   ;;  %s1800_s14 = sphi %s1841_s14, %s2702_s14   ;;  %s1796_s13 = sphi %s1839_s13, %s2701_s13   ;;  %s1792_s12 = sphi %s1837_s12, %s2700_s12  }
   0xa   : > { %s1862_s18 = sadd.s32 1, %s1804_s15   ;;  %s28_s19 = sadd.s32 1, %s1800_s14 }
   0xb   : > { %s25_s20 = ssub.s32 %s1804_s15, %s1862_s18  ;;  %p35_p0 = scmp.ne.s32.totalorder %s1800_s14, %s1796_s13 }
   0xc   : > { %p26_p1 = scmp.eq.s32.totalorder %s25_s20, 0  ;;  %p36_p2 = scmp.eq.s32.totalorder %s1804_s15, 0 }
   0xd   : > { %p41_p3 = scmp.ne.s32.totalorder %s1796_s13, %s1792_s12  ;;  %p42_p4 = scmp.eq.s32.totalorder %s1858_s16, 0 }
   0xe   : > { %s1874_s21 = scalar_select %p26_p1, %s1800_s14, %s28_s19  }
   0xf   : > { %p1876_p5 = por %p36_p2, %p35_p0  ;;  %p1882_p6 = por %p42_p4, %p41_p3 }
  0x10   : > { %p107_p7 = scmp.eq.s32.totalorder %s1858_s16, 1  ;;  %p113_p8 = scmp.eq.s32.totalorder %s1444_s17, 1 }
  0x11   : > { %p1445_p9 = scmp.ge.s32.totalorder %s1804_s15, 1  ;;  %p120_p10 = scmp.lt.s32.totalorder %s1804_s15, 3 }
  0x12   : > { %p1889_p11 = por %p107_p7, %p35_p0  ;;  %p1893_p12 = por %p113_p8, %p41_p3 }
  0x13   : > { %p1897_p13 = pnand %p1445_p9, %p120_p10  ;;  %s2697_s1 = sld [smem:[#allocation15_spill]] }
  0x14   : > { %p1581_p2 = scmp.lt.s32.totalorder %s1804_s15, 2  ;;  %s142_s5 = sshll.u32 %s2689_s2, 4  ;;  %s143_s5 = int_to_ptr.vmem [resolvable:$true] %s142_s5 }
  0x15   : > { %p1564_p1 = pneg %p1897_p13  ;;  %s1806_s7 = smov [#allocation8]  }
  0x16   : > { %p1915_p7 = pnand %p1581_p2, %p1876_p5  ;;  %s153_s8 = sand.u32 1, %s1800_s14  }
  0x17   : > { %p1565_p3 = pnand %p1564_p1, %p42_p4  ;;  %s1807_s9 = smov [#allocation9]  }
  0x18   : > { %s1449_s10 = sshll.u32 %s153_s8, 4  ;;  %s1550_s11 = sshll.u32 %s1804_s15, 4 }
  0x19   : > { %s132_s29 = sshll.u32 %s2697_s1, 4  ;;  %s162_s20 = scalar_lea.hbm %s2687_s0, %s1550_s11  ;;  %s133_s29 = int_to_ptr.hbm [resolvable:$true] %s132_s29 }
  0x1a   : > { %1567 = dma.hbm_to_smem (!%p1565_p3), %s133_s29, 16, %s1806_s7, [#allocation6]  }
  0x1b   : > { %1570 = dma.vmem_to_smem (!%p1565_p3), %s143_s5, 16, %s1807_s9, [#allocation7]  }
  0x1c   : > { %s157_s27 = scalar_lea.vmem [#allocation3], %s1449_s10  ;;  %s163_s22 = sshll.u32 %s162_s20, 4  ;;  %s164_s22 = int_to_ptr.hbm [resolvable:$true] %s163_s22 }
  0x1d   : > { %s165_s28 = sshll.u32 %s157_s27, 4  ;;  %s154_s30 = scalar_lea.sflag [#allocation4], %s153_s8  ;;  %s166_s28 = int_to_ptr.vmem [resolvable:$true] %s165_s28 }
  0x1e   : > { %s1700_s4 = sshra.s32 %s164_s22, 4  ;;  %p1704_p8 = pneg %p1915_p7  ;;  %s1701_s4 = int_to_ptr.hbm [resolvable:$true] %s1700_s4 }
  0x1f   : > { %s1702_s1 = scalar_lea.hbm %s1701_s4, 16  ;;  %s1707_s7 = scalar_lea.hbm %s2687_s0, 32 }
  0x20   : > { %p1703_p5 = scmp.ne.s32.totalorder %s1701_s4, %s1702_s1  ;;  %p1708_p1 = scmp.lt.s32.totalorder %s1701_s4, %s2687_s0 }
  0x21   : > { %p1709_p2 = scmp.lt.s32.totalorder %s1707_s7, %s1702_s1 }
  0x22   : > { %p1705_p9 = pnand %p1704_p8, %p1703_p5 }
  0x23   : > { %p1710_p3 = por %p1709_p2, %p1708_p1 }
  0x24   : > { %p1706_p10 = pneg %p1705_p9 }
  0x26   : > { %p1711_p0 = pnand %p1710_p3, %p1706_p10 }
  0x28   : > { %1714 = shalt.err (!%p1711_p0)
}
  0x29   : > { %s1808_s8 = smov 128   ;;  %s1809_s10 = smov 8  }
  0x2a   : > { %1574 = dma.hbm_to_vmem [thread:$0]  (!%p1915_p7), %s164_s22, 256, %s166_s28, %s154_s30, %s1808_s8, %s1808_s8, %s1809_s10  }
  0x2b   : > { %177 = sbr.rel (%p1897_p13) target bundleno = 899 (0x383), region = 32  ;;  %s1937_s17 = sand.u32 (!%p1897_p13), 1, %s1796_s13  }
  0x2c   : > { %s1453_s19 = sshll.u32 (!%p1897_p13), %s1937_s17, 4  ;;  %s180_s1 = scalar_lea.sflag (!%p1897_p13), [#allocation4], %s1937_s17 }
  0x2d   : > { %s183_s20 = scalar_lea.vmem (!%p1897_p13), [#allocation3], %s1453_s19 }
  0x30   : > { %1775 = dma.done.wait (%p1882_p6), %s180_s1, 256  }
  0x31   : > { %1777 = vsyncadd (%p1882_p6), %s180_s1, 4294967040 }
  0x32   : > { %1779 = dma.done.wait (%p42_p4), [#allocation6], 16  }
  0x33   : > { %1781 = vsyncadd (%p42_p4), [#allocation6], 4294967280 }
  0x34   : > { %1783 = dma.done.wait (%p42_p4), [#allocation7], 16  }
  0x35   : > { %1785 = vsyncadd (%p42_p4), [#allocation7], 4294967280 }
  0x36   : > { %199 = sfence }
  0x37   : > { %v223_v0 = vld [vmem:[%s183_s20] sm:$0xff]  ;;  %s1810_s26 = smov 1   ;;  %v224_v1 = vld [vmem:[%s183_s20 + $0x8] sm:$0xff]  ;;  %vm218_vm0 = vcmask 146432   ;;  %v1811_v2 = vmov 0.0   ;;  %vm221_vm1 = vcmask 140288  }
  0x38   : > { %227 = vrot.lane.b32.xlu0 %v223_v0, %s1810_s26  ;;  %219 = vst.msk [vmem:[#allocation2] sm:$0xff] %vm218_vm0, %v1811_v2  ;;  %s1957_s23 = sld [smem:[#allocation8 + $0x4]]  ;;  %vm233_vm2 = vcmask 138248   ;;  %s1812_s22 = smov 127   ;;  %vm1328_vm3 = vcmask 130048  }
  0x39   : > { %220 = vst.msk [vmem:[#allocation2 + $0x8] sm:$0xff] %vm218_vm0, %v1811_v2  ;;  %s1458_s6 = sld [smem:[#allocation8 + $0x2]]  ;;  %s1813_s30 = smov 126  }
  0x3a   : > { %222 = vst.msk [vmem:[#allocation2 + $0x10] sm:$0x3] %vm221_vm1, %v1811_v2  ;;  %s1457_s27 = sld [smem:[#allocation8 + $0x1]] }
  0x3b   : > { %s1461_s28 = sld [smem:[#allocation8 + $0x5]] }
  0x3c   : > { %s1970_s4 = sld [smem:[#allocation8 + $0x8]] }
  0x3d   : > { %s1463_s29 = sld [smem:[#allocation8 + $0x7]] }
  0x3e   : > { %v285_v4 = vstv %s1957_s23  ;;  %s1467_s5 = sld [smem:[#allocation8 + $0xa]] }
  0x3f   : > { %v265_v5 = vstv %s1458_s6  ;;  %s1993_s7 = sld [smem:[#allocation8 + $0xd]] }
  0x40   : > { %229 = vrot.lane.b32.xlu0 %v224_v1, %s1810_s26  ;;  %v251_v6 = vstv %s1457_s27  ;;  %s1468_s9 = sld [smem:[#allocation8 + $0xb]] }
  0x41   : > { %v299_v15 = vstv %s1461_s28  ;;  %s1471_s11 = sld [smem:[#allocation8 + $0xe]] }
  0x42   : > { %v333_v20 = vstv %s1970_s4  ;;  %s2008_s8 = sld [smem:[#allocation8 + $0x11]] }
  0x43   : > { %v319_v25 = vstv %s1463_s29  ;;  %s1473_s10 = sld [smem:[#allocation8 + $0x10]] }
  0x44   : > { %v361_v26 = vstv %s1467_s5  ;;  %s1477_s1 = sld [smem:[#allocation8 + $0x13]] }
  0x45   : > { %v395_v30 = vstv %s1993_s7  ;;  %s2023_s20 = sld [smem:[#allocation8 + $0x16]] }
  0x46   : > { %v375_v34 = vstv %s1468_s9  ;;  %s1478_s23 = sld [smem:[#allocation8 + $0x14]] }
  0x47   : > { %v409_v35 = vstv %s1471_s11  ;;  %s1481_s6 = sld [smem:[#allocation8 + $0x17]] }
  0x48   : > { %v443_v39 = vstv %s2008_s8  ;;  %s2038_s27 = sld [smem:[#allocation8 + $0x1a]] }
  0x49   : > { %v429_v43 = vstv %s1473_s10  ;;  %s1483_s28 = sld [smem:[#allocation8 + $0x19]] }
  0x4a   : > { %v471_v44 = vstv %s1477_s1  ;;  %s1487_s4 = sld [smem:[#allocation8 + $0x1c]] }
  0x4b   : > { %v505_v48 = vstv %s2023_s20  ;;  %s2053_s29 = sld [smem:[#allocation8 + $0x1f]] }
  0x4c   : > { %v485_v52 = vstv %s1478_s23  ;;  %s1488_s5 = sld [smem:[#allocation8 + $0x1d]] }
  0x4d   : > { %v519_v53 = vstv %s1481_s6  ;;  %s1491_s7 = sld [smem:[#allocation8 + $0x20]] }
  0x4e   : > { %v553_v57 = vstv %s2038_s27  ;;  %s2068_s9 = sld [smem:[#allocation8 + $0x23]] }
  0x4f   : > { %v539_v61 = vstv %s1483_s28  ;;  %s2070_s11 = sld [smem:[#allocation8]] }
  0x50   : > { %v581_v62 = vstv %s1487_s4  ;;  %s2075_s8 = sld [smem:[#allocation9]] }
  0x51   : > { %s2080_s10 = sld [smem:[#allocation8 + $0x3]] }
  0x52   : > { %s2082_s1 = sld [smem:[#allocation8 + $0x25]] }
  0x53   : > { %s1493_s20 = sld [smem:[#allocation8 + $0x22]] }
  0x54   : > { %s1498_s23 = sld [smem:[#allocation8 + $0x26]] }
  0x55   : > { %s2108_s6 = sld [smem:[#allocation8 + $0x29]] }
  0x56   : > { %s2110_s27 = sld [smem:[#allocation8 + $0x6]] }
  0x57   : > { %s2112_s28 = sld [smem:[#allocation8 + $0x9]] }
  0x58   : > { %s2114_s4 = sld [smem:[#allocation8 + $0x28]] }
  0xaa   : > { %v228_v3 = vpop.permute.xlu0 %227 }
  0xab   : > { %234 = vst.msk [vmem:[#allocation2 + $0x1] sm:$0xff] %vm233_vm2, %v228_v3  ;;  %v615_v3 = vstv %s2053_s29  ;;  %s2119_s29 = sld [smem:[#allocation9 + $0x1]] }
  0xb2   : > { %v1960_v7 = vld [vmem:[#allocation2] sm:$0xff]  ;;  %v230_v9 = vpop.permute.xlu0 %229 }
  0xb3   : > { %v1962_v8 = vld [vmem:[#allocation2 + $0x1] sm:$0xff]  ;;  %235 = vst.msk [vmem:[#allocation2 + $0x9] sm:$0xff] %vm233_vm2, %v230_v9  ;;  %v266_v11 = vmul.f32 %v265_v5, %v1960_v7  ;;  %v252_v12 = vmul.f32 %v251_v6, %v1960_v7  ;;  %v362_v32 = vmul.f32 %v361_v26, %v1960_v7  ;;  %v376_v38 = vmul.f32 %v375_v34, %v1960_v7 }
  0xb4   : > { %v286_v10 = vmul.f32 %v285_v4, %v1962_v8  ;;  %v300_v22 = vmul.f32 %v299_v15, %v1962_v8  ;;  %v396_v31 = vmul.f32 %v395_v30, %v1962_v8  ;;  %v410_v41 = vmul.f32 %v409_v35, %v1962_v8 }
  0xb5   : > { %270 = vrot.lane.b32.xlu2 %v266_v11, %s1813_s30  ;;  %256 = vrot.lane.b32.xlu1 %v252_v12, %s1812_s22  ;;  %v506_v49 = vmul.f32 %v505_v48, %v1962_v8  ;;  %v472_v50 = vmul.f32 %v471_v44, %v1960_v7  ;;  %v486_v56 = vmul.f32 %v485_v52, %v1960_v7  ;;  %v629_v11 = vstv %s1491_s7  ;;  %s2140_s7 = sld [smem:[#allocation8 + $0x2f]] }
  0xb6   : > { %290 = vrot.lane.b32.xlu0 %v286_v10, %s1812_s22  ;;  %v520_v59 = vmul.f32 %v519_v53, %v1962_v8  ;;  %v595_v10 = vstv %s1488_s5  ;;  %s1503_s5 = sld [smem:[#allocation8 + $0x2b]] }
  0xba   : > { %v1972_v13 = vld [vmem:[#allocation2 + $0x8] sm:$0xff] }
  0xbb   : > { %v1974_v14 = vld [vmem:[#allocation2 + $0x9] sm:$0xff]  ;;  %v267_v16 = vmul.f32 %v265_v5, %v1972_v13  ;;  %v253_v17 = vmul.f32 %v251_v6, %v1972_v13  ;;  %v363_v27 = vmul.f32 %v361_v26, %v1972_v13  ;;  %v377_v37 = vmul.f32 %v375_v34, %v1972_v13 }
  0xbc   : > { %v301_v18 = vmul.f32 %v299_v15, %v1974_v14  ;;  %v1982_v19 = vld [vmem:[#allocation2 + $0x2] sm:$0xff]  ;;  %v287_v23 = vmul.f32 %v285_v4, %v1974_v14  ;;  %v1991_v24 = vld [vmem:[#allocation2 + $0xa] sm:$0xff]  ;;  %v411_v36 = vmul.f32 %v409_v35, %v1974_v14  ;;  %v397_v42 = vmul.f32 %v395_v30, %v1974_v14 }
  0xbd   : > { %272 = vrot.lane.b32.xlu2 %v267_v16, %s1813_s30  ;;  %258 = vrot.lane.b32.xlu1 %v253_v17, %s1812_s22  ;;  %v334_v21 = vmul.f32 %v333_v20, %v1982_v19  ;;  %v321_v28 = vmul.f32 %v319_v25, %v1991_v24  ;;  %v320_v29 = vmul.f32 %v319_v25, %v1982_v19  ;;  %v243_v26 = vstv %s2075_s8  ;;  %s2161_s8 = sld [smem:[#allocation8 + $0x31]] }
  0xbe   : > { %306 = vrot.lane.b32.xlu0 %v301_v18, %s1813_s30  ;;  %v335_v33 = vmul.f32 %v333_v20, %v1991_v24  ;;  %v444_v40 = vmul.f32 %v443_v39, %v1982_v19  ;;  %v473_v45 = vmul.f32 %v471_v44, %v1972_v13  ;;  %v431_v46 = vmul.f32 %v429_v43, %v1991_v24 }
  0xbf   : > { %v430_v47 = vmul.f32 %v429_v43, %v1982_v19  ;;  %v445_v51 = vmul.f32 %v443_v39, %v1991_v24  ;;  %v521_v54 = vmul.f32 %v519_v53, %v1974_v14  ;;  %v487_v55 = vmul.f32 %v485_v52, %v1972_v13 }
  0xc0   : > { %v554_v58 = vmul.f32 %v553_v57, %v1982_v19  ;;  %v507_v60 = vmul.f32 %v505_v48, %v1974_v14  ;;  %v583_v63 = vmul.f32 %v581_v62, %v1972_v13  ;;  %v541_v0 = vmul.f32 %v539_v61, %v1991_v24 }
  0xc1   : > { %v540_v1 = vmul.f32 %v539_v61, %v1982_v19  ;;  %v616_v4 = vmul.f32 %v615_v3, %v1962_v8  ;;  %v582_v5 = vmul.f32 %v581_v62, %v1960_v7  ;;  %v555_v6 = vmul.f32 %v553_v57, %v1991_v24 }
  0xc2   : > { %v631_v12 = vmul.f32 %v629_v11, %v1974_v14  ;;  %v597_v15 = vmul.f32 %v595_v10, %v1972_v13  ;;  %v596_v16 = vmul.f32 %v595_v10, %v1960_v7  ;;  %v663_v18 = vstv %s2068_s9  ;;  %s2142_s9 = sld [smem:[#allocation8 + $0x2c]] }
  0xc3   : > { %v245_v20 = vstv %s2070_s11  ;;  %v617_v25 = vmul.f32 %v615_v3, %v1974_v14  ;;  %v665_v53 = vmul.f32 %v663_v18, %v1991_v24  ;;  %v355_v61 = vstv %s2112_s28  ;;  %s2152_s11 = sld [smem:[#allocation8 + $0xc]] }
  0xc4   : > { %v247_v39 = vmul.f32 %v245_v20, %v1972_v13  ;;  %s2201_s28 = sld [smem:[#allocation8 + $0x32]] }
  0xc5   : > { %304 = vrot.lane.b32.xlu2 %v300_v22, %s1813_s30  ;;  %292 = vrot.lane.b32.xlu1 %v287_v23, %s1812_s22  ;;  %v630_v22 = vmul.f32 %v629_v11, %v1962_v8  ;;  %v246_v23 = vmul.f32 %v245_v20, %v1960_v7 }
  0xc6   : > { %338 = vrot.lane.b32.xlu0 %v334_v21, %s1813_s30  ;;  %v664_v21 = vmul.f32 %v663_v18, %v1982_v19  ;;  %v249_v44 = vadd.f32 %v247_v39, %v243_v26 }
  0xc7   : > { %v248_v30 = vadd.f32 %v246_v23, %v243_v26 }
  0xcd   : > { %326 = vrot.lane.b32.xlu2 %v321_v28, %s1812_s22  ;;  %324 = vrot.lane.b32.xlu1 %v320_v29, %s1812_s22  ;;  %v279_v29 = vstv %s2080_s10  ;;  %s2163_s10 = sld [smem:[#allocation8 + $0x2e]] }
  0xce   : > { %368 = vrot.lane.b32.xlu0 %v363_v27, %s1812_s22  ;;  %v280_v35 = vmul.f32 %v279_v29, %v1962_v8 }
  0xd5   : > { %366 = vrot.lane.b32.xlu2 %v362_v32, %s1812_s22  ;;  %340 = vrot.lane.b32.xlu1 %v335_v33, %s1813_s30  ;;  %v707_v32 = vstv %s2082_s1  ;;  %v649_v33 = vstv %s1493_s20  ;;  %s2177_s1 = sld [smem:[#allocation8 + $0x34]] }
  0xd6   : > { %400 = vrot.lane.b32.xlu0 %v396_v31, %s1812_s22  ;;  %s2179_s20 = sld [smem:[#allocation8 + $0xf]] }
  0xdd   : > { %382 = vrot.lane.b32.xlu2 %v377_v37, %s1813_s30  ;;  %380 = vrot.lane.b32.xlu1 %v376_v38, %s1813_s30  ;;  %v708_v37 = vmul.f32 %v707_v32, %v1960_v7  ;;  %v651_v38 = vmul.f32 %v649_v33, %v1991_v24 }
  0xde   : > { %416 = vrot.lane.b32.xlu0 %v411_v36, %s1813_s30 }
  0xe5   : > { %414 = vrot.lane.b32.xlu2 %v410_v41, %s1813_s30  ;;  %402 = vrot.lane.b32.xlu1 %v397_v42, %s1812_s22 }
  0xe6   : > { %448 = vrot.lane.b32.xlu0 %v444_v40, %s1813_s30  ;;  %v650_v40 = vmul.f32 %v649_v33, %v1982_v19  ;;  %v789_v33 = vstv %s2142_s9  ;;  %s2249_s9 = sld [smem:[#allocation8 + $0x49]] }
  0xed   : > { %436 = vrot.lane.b32.xlu2 %v431_v46, %s1812_s22  ;;  %434 = vrot.lane.b32.xlu1 %v430_v47, %s1812_s22  ;;  %v721_v47 = vstv %s1498_s23  ;;  %s2181_s23 = sld [smem:[#allocation8 + $0x12]] }
  0xee   : > { %478 = vrot.lane.b32.xlu0 %v473_v45, %s1812_s22  ;;  %v722_v52 = vmul.f32 %v721_v47, %v1960_v7 }
  0xf5   : > { %476 = vrot.lane.b32.xlu2 %v472_v50, %s1812_s22  ;;  %450 = vrot.lane.b32.xlu1 %v445_v51, %s1813_s30  ;;  %v723_v51 = vmul.f32 %v721_v47, %v1972_v13 }
  0xf6   : > { %510 = vrot.lane.b32.xlu0 %v506_v49, %s1812_s22 }
  0xfd   : > { %492 = vrot.lane.b32.xlu2 %v487_v55, %s1813_s30  ;;  %490 = vrot.lane.b32.xlu1 %v486_v56, %s1813_s30 }
  0xfe   : > { %526 = vrot.lane.b32.xlu0 %v521_v54, %s1813_s30  ;;  %v281_v54 = vmul.f32 %v279_v29, %v1974_v14 }
 0x105   : > { %524 = vrot.lane.b32.xlu2 %v520_v59, %s1813_s30  ;;  %512 = vrot.lane.b32.xlu1 %v507_v60, %s1812_s22  ;;  %v755_v59 = vstv %s2108_s6  ;;  %v313_v60 = vstv %s2110_s27  ;;  %s2189_s6 = sld [smem:[#allocation9 + $0x2]] }
 0x106   : > { %558 = vrot.lane.b32.xlu0 %v554_v58, %s1813_s30  ;;  %s2197_s27 = sld [smem:[#allocation8 + $0x35]] }
 0x10d   : > { %546 = vrot.lane.b32.xlu2 %v541_v0, %s1812_s22  ;;  %544 = vrot.lane.b32.xlu1 %v540_v1, %s1812_s22  ;;  %v357_v0 = vmul.f32 %v355_v61, %v1972_v13 }
 0x10e   : > { %588 = vrot.lane.b32.xlu0 %v583_v63, %s1812_s22  ;;  %v741_v63 = vstv %s2114_s4  ;;  %s2216_s4 = sld [smem:[#allocation8 + $0x38]] }
 0x10f   : > { %v271_v2 = vpop.permute.xlu2 %270  ;;  %v743_v3 = vmul.f32 %v741_v63, %v1974_v14 }
 0x115   : > { %586 = vrot.lane.b32.xlu2 %v582_v5, %s1812_s22  ;;  %560 = vrot.lane.b32.xlu1 %v555_v6, %s1813_s30  ;;  %v709_v5 = vmul.f32 %v707_v32, %v1972_v13  ;;  %v353_v6 = vstv %s2119_s29  ;;  %v847_v32 = vstv %s2140_s7  ;;  %s2227_s29 = sld [smem:[#allocation8 + $0x15]] }
 0x116   : > { %620 = vrot.lane.b32.xlu0 %v616_v4, %s1812_s22  ;;  %v315_v4 = vmul.f32 %v313_v60, %v1991_v24  ;;  %v359_v11 = vadd.f32 %v357_v0, %v353_v6  ;;  %s2235_s7 = sld [smem:[#allocation8 + $0x37]] }
 0x117   : > { %v273_v9 = vpop.permute.xlu2 %272 }
 0x11d   : > { %602 = vrot.lane.b32.xlu2 %v597_v15, %s1813_s30  ;;  %600 = vrot.lane.b32.xlu1 %v596_v16, %s1813_s30 }
 0x11e   : > { %636 = vrot.lane.b32.xlu0 %v631_v12, %s1813_s30 }
 0x11f   : > { %v305_v17 = vpop.permute.xlu2 %304 }
 0x125   : > { %634 = vrot.lane.b32.xlu2 %v630_v22, %s1813_s30  ;;  %622 = vrot.lane.b32.xlu1 %v617_v25, %s1812_s22 }
 0x126   : > { %668 = vrot.lane.b32.xlu0 %v664_v21, %s1813_s30  ;;  %v775_v21 = vstv %s1503_s5  ;;  %s2233_s5 = sld [smem:[#allocation8 + $0x40]] }
 0x127   : > { %v2094_v28 = vpop.permute.xlu2 %326  ;;  %v257_v31 = vpop.permute.xlu1 %256  ;;  %v777_v26 = vmul.f32 %v775_v21, %v1991_v24 }
 0x128   : > { %v291_v27 = vpop.permute.xlu0 %290  ;;  %v262_v34 = vadd.f32 %v257_v31, %v248_v30 }
 0x12a   : > { %v276_v36 = vadd.f32 %v271_v2, %v262_v34  ;;  %v756_v2 = vmul.f32 %v755_v59, %v1962_v8  ;;  %v356_v34 = vmul.f32 %v355_v61, %v1960_v7  ;;  %v423_v61 = vstv %s2179_s20  ;;  %s2294_s20 = sld [smem:[#allocation8 + $0x3b]] }
 0x12c   : > { %v282_v41 = vadd.f32 %v280_v35, %v276_v36  ;;  %v848_v36 = vmul.f32 %v847_v32, %v1960_v7  ;;  %v358_v39 = vadd.f32 %v356_v34, %v353_v6  ;;  %v463_v6 = vstv %s2189_s6  ;;  %s2313_s6 = sld [smem:[#allocation8 + $0x1e]] }
 0x12d   : > { %656 = vrot.lane.b32.xlu2 %v651_v38, %s1812_s22  ;;  %654 = vrot.lane.b32.xlu1 %v650_v40, %s1812_s22  ;;  %v757_v38 = vmul.f32 %v755_v59, %v1974_v14  ;;  %v389_v40 = vstv %s2152_s11  ;;  %s2251_s11 = sld [smem:[#allocation8 + $0x18]] }
 0x12e   : > { %712 = vrot.lane.b32.xlu0 %v708_v37, %s1812_s22  ;;  %v296_v45 = vadd.f32 %v291_v27, %v282_v41  ;;  %v776_v27 = vmul.f32 %v775_v21, %v1982_v19  ;;  %v791_v37 = vmul.f32 %v789_v33, %v1991_v24  ;;  %v915_v21 = vstv %s2197_s27  ;;  %s2319_s27 = sld [smem:[#allocation8 + $0x43]] }
 0x12f   : > { %v2106_v43 = vpop.permute.xlu2 %366  ;;  %v259_v46 = vpop.permute.xlu1 %258 }
 0x130   : > { %v307_v42 = vpop.permute.xlu0 %306  ;;  %v263_v48 = vadd.f32 %v259_v46, %v249_v44  ;;  %v310_v49 = vadd.f32 %v305_v17, %v296_v45  ;;  %v372_v41 = vadd.f32 %v2106_v43, %v358_v39  ;;  %v390_v46 = vmul.f32 %v389_v40, %v1962_v8 }
 0x131   : > { %v916_v39 = vmul.f32 %v915_v21, %v1982_v19 }
 0x132   : > { %v277_v50 = vadd.f32 %v273_v9, %v263_v48  ;;  %v314_v9 = vmul.f32 %v313_v60, %v1982_v19  ;;  %v867_v48 = vstv %s2161_s8  ;;  %v901_v60 = vstv %s2177_s1  ;;  %s2271_s8 = sld [smem:[#allocation8 + $0x3a]] }
 0x133   : > { %v869_v43 = vmul.f32 %v867_v48, %v1974_v14  ;;  %s2288_s1 = sld [smem:[#allocation8 + $0x1b]] }
 0x134   : > { %v283_v57 = vadd.f32 %v281_v54, %v277_v50  ;;  %v316_v16 = vadd.f32 %v314_v9, %v310_v49  ;;  %v833_v49 = vstv %s2163_s10  ;;  %v391_v54 = vmul.f32 %v389_v40, %v1974_v14  ;;  %s2277_s10 = sld [smem:[#allocation8 + $0x41]] }
 0x135   : > { %726 = vrot.lane.b32.xlu2 %v722_v52, %s1813_s30  ;;  %670 = vrot.lane.b32.xlu1 %v665_v53, %s1813_s30  ;;  %v790_v52 = vmul.f32 %v789_v33, %v1982_v19  ;;  %v424_v9 = vmul.f32 %v423_v61, %v1982_v19 }
 0x136   : > { %728 = vrot.lane.b32.xlu0 %v723_v51, %s1813_s30  ;;  %v835_v51 = vmul.f32 %v833_v49, %v1972_v13 }
 0x137   : > { %v383_v56 = vpop.permute.xlu2 %382  ;;  %v293_v58 = vpop.permute.xlu1 %292 }
 0x138   : > { %v339_v55 = vpop.permute.xlu0 %338  ;;  %v297_v62 = vadd.f32 %v293_v58, %v283_v57 }
 0x13a   : > { %v311_v1 = vadd.f32 %v307_v42, %v297_v62  ;;  %v465_v62 = vstv %s2181_s23  ;;  %s2298_s23 = sld [smem:[#allocation9 + $0x3]] }
 0x13b   : > { %v467_v0 = vmul.f32 %v465_v62, %v1972_v13 }
 0x13c   : > { %v317_v10 = vadd.f32 %v315_v4, %v311_v1  ;;  %v425_v4 = vmul.f32 %v423_v61, %v1991_v24  ;;  %v1211_v61 = vstv %s2249_s9  ;;  %s1495_s9 = sld [smem:[#allocation9 + $0x4]] }
 0x13d   : > { %748 = vrot.lane.b32.xlu2 %v743_v3, %s1812_s22  ;;  %714 = vrot.lane.b32.xlu1 %v709_v5, %s1812_s22  ;;  %v868_v3 = vmul.f32 %v867_v48, %v1962_v8  ;;  %v834_v5 = vmul.f32 %v833_v49, %v1960_v7 }
 0x13e   : > { %760 = vrot.lane.b32.xlu0 %v756_v2, %s1813_s30  ;;  %v331_v17 = vadd.f32 %v2094_v28, %v317_v10  ;;  %v742_v28 = vmul.f32 %v741_v63, %v1962_v8  ;;  %v902_v2 = vmul.f32 %v901_v60, %v1982_v19 }
 0x13f   : > { %v415_v15 = vpop.permute.xlu2 %414  ;;  %v325_v20 = vpop.permute.xlu1 %324 }
 0x140   : > { %v369_v12 = vpop.permute.xlu0 %368  ;;  %v330_v22 = vadd.f32 %v325_v20, %v316_v16 }
 0x141   : > { %v373_v18 = vadd.f32 %v369_v12, %v359_v11  ;;  %v469_v11 = vadd.f32 %v467_v0, %v463_v6  ;;  %v533_v0 = vstv %s2251_s11  ;;  %s2389_s11 = sld [smem:[#allocation8 + $0x3d]] }
 0x142   : > { %v2144_v25 = vadd.f32 %v339_v55, %v330_v22 }
 0x143   : > { %v387_v23 = vadd.f32 %v383_v56, %v373_v18 }
 0x144   : > { %1628 = vtanh.f32 %v2144_v25 }
 0x145   : > { %780 = vrot.lane.b32.xlu2 %v776_v27, %s1812_s22  ;;  %746 = vrot.lane.b32.xlu1 %v742_v28, %s1812_s22  ;;  %v393_v57 = vadd.f32 %v391_v54, %v387_v23  ;;  %v917_v28 = vmul.f32 %v915_v21, %v1991_v24  ;;  %v903_v54 = vmul.f32 %v901_v60, %v1991_v24 }
 0x146   : > { %782 = vrot.lane.b32.xlu0 %v777_v26, %s1812_s22  ;;  %v881_v26 = vstv %s2201_s28  ;;  %s2322_s28 = sld [smem:[#allocation8 + $0x4a]] }
 0x147   : > { %v2154_v30 = vpop.permute.xlu2 %436  ;;  %v341_v31 = vpop.permute.xlu1 %340  ;;  %v882_v40 = vmul.f32 %v881_v26, %v1962_v8 }
 0x148   : > { %v401_v29 = vpop.permute.xlu0 %400  ;;  %v2159_v35 = vadd.f32 %v341_v31, %v331_v17  ;;  %v849_v31 = vmul.f32 %v847_v32, %v1972_v13 }
 0x14d   : > { %796 = vrot.lane.b32.xlu2 %v791_v37, %s1813_s30  ;;  %762 = vrot.lane.b32.xlu1 %v757_v38, %s1813_s30  ;;  %v466_v37 = vmul.f32 %v465_v62, %v1960_v7 }
 0x14e   : > { %852 = vrot.lane.b32.xlu0 %v848_v36, %s1813_s30  ;;  %v973_v36 = vstv %s2216_s4  ;;  %s2337_s4 = sld [smem:[#allocation8 + $0x4c]] }
 0x14f   : > { %v2175_v44 = vpop.permute.xlu2 %476  ;;  %v381_v45 = vpop.permute.xlu1 %380  ;;  %v974_v32 = vmul.f32 %v973_v36, %v1960_v7 }
 0x150   : > { %v417_v42 = vpop.permute.xlu0 %416  ;;  %v386_v47 = vadd.f32 %v381_v45, %v372_v41  ;;  %v468_v41 = vadd.f32 %v466_v37, %v463_v6  ;;  %v975_v37 = vmul.f32 %v973_v36, %v1972_v13  ;;  %v573_v36 = vstv %s2298_s23  ;;  %s1509_s23 = sld [smem:[#allocation8 + $0x30]] }
 0x152   : > { %v392_v50 = vadd.f32 %v390_v46, %v386_v47  ;;  %v482_v45 = vadd.f32 %v2175_v44, %v468_v41  ;;  %v1007_v41 = vstv %s2294_s20  ;;  %s1505_s20 = sld [smem:[#allocation9 + $0x5]] }
 0x154   : > { %v406_v53 = vadd.f32 %v401_v29, %v392_v50  ;;  %v883_v29 = vmul.f32 %v881_v26, %v1974_v14 }
 0x155   : > { %840 = vrot.lane.b32.xlu2 %v835_v51, %s1812_s22  ;;  %794 = vrot.lane.b32.xlu1 %v790_v52, %s1813_s30  ;;  %v959_v51 = vstv %s2235_s7  ;;  %s1496_s7 = sld [smem:[#allocation8 + $0x24]] }
 0x156   : > { %874 = vrot.lane.b32.xlu0 %v869_v43, %s1812_s22  ;;  %v420_v58 = vadd.f32 %v415_v15, %v406_v53  ;;  %v1085_v43 = vstv %s2233_s5  ;;  %v961_v53 = vmul.f32 %v959_v51, %v1972_v13  ;;  %s2361_s5 = sld [smem:[#allocation8 + $0x44]] }
 0x157   : > { %v493_v56 = vpop.permute.xlu2 %492  ;;  %v403_v59 = vpop.permute.xlu1 %402  ;;  %v1087_v44 = vmul.f32 %v1085_v43, %v1972_v13 }
 0x158   : > { %v449_v55 = vpop.permute.xlu0 %448  ;;  %v407_v63 = vadd.f32 %v403_v59, %v393_v57  ;;  %v426_v16 = vadd.f32 %v424_v9, %v420_v58  ;;  %v960_v9 = vmul.f32 %v959_v51, %v1960_v7  ;;  %v609_v51 = vstv %s2313_s6  ;;  %s2429_s6 = sld [smem:[#allocation8 + $0x3e]] }
 0x15a   : > { %v421_v1 = vadd.f32 %v417_v42, %v407_v63  ;;  %v499_v42 = vstv %s2227_s29  ;;  %s2342_s29 = sld [smem:[#allocation8 + $0x21]] }
 0x15b   : > { %v500_v49 = vmul.f32 %v499_v42, %v1962_v8  ;;  %v501_v25 = vmul.f32 %v499_v42, %v1974_v14 }
 0x15c   : > { %v427_v10 = vadd.f32 %v425_v4, %v421_v1  ;;  %v535_v4 = vmul.f32 %v533_v0, %v1991_v24 }
 0x15d   : > { %872 = vrot.lane.b32.xlu2 %v868_v3, %s1812_s22  ;;  %838 = vrot.lane.b32.xlu1 %v834_v5, %s1812_s22  ;;  %v1086_v3 = vmul.f32 %v1085_v43, %v1960_v7 }
 0x15e   : > { %906 = vrot.lane.b32.xlu0 %v902_v2, %s1812_s22  ;;  %v441_v17 = vadd.f32 %v2154_v30, %v427_v10  ;;  %v1212_v2 = vmul.f32 %v1211_v61, %v1960_v7 }
 0x15f   : > { %v525_v15 = vpop.permute.xlu2 %524  ;;  %v435_v20 = vpop.permute.xlu1 %434 }
 0x160   : > { %v479_v12 = vpop.permute.xlu0 %478  ;;  %v440_v22 = vadd.f32 %v435_v20, %v426_v16 }
 0x161   : > { %v483_v18 = vadd.f32 %v479_v12, %v469_v11  ;;  %v534_v11 = vmul.f32 %v533_v0, %v1982_v19  ;;  %v1213_v0 = vmul.f32 %v1211_v61, %v1972_v13  ;;  %v643_v61 = vstv %s2342_s29  ;;  %s2446_s29 = sld [smem:[#allocation9 + $0x7]] }
 0x162   : > { %v454_v27 = vadd.f32 %v449_v55, %v440_v22 }
 0x163   : > { %v497_v23 = vadd.f32 %v493_v56, %v483_v18  ;;  %v1629_v56 = vpop.eup %1628 }
 0x164   : > { %1630 = vtanh.f32 %v454_v27  ;;  %v348_v6 = vmul.f32 %v1629_v56, %v1960_v7  ;;  %v610_v56 = vmul.f32 %v609_v51, %v1962_v8 }
 0x165   : > { %888 = vrot.lane.b32.xlu2 %v883_v29, %s1813_s30  ;;  %854 = vrot.lane.b32.xlu1 %v849_v31, %s1813_s30  ;;  %1632 = vtanh.f32 %v2159_v35  ;;  %v503_v59 = vadd.f32 %v501_v25, %v497_v23  ;;  %v1099_v29 = vstv %s2277_s10  ;;  %s1502_s10 = sld [smem:[#allocation8 + $0x2a]] }
 0x166   : > { %922 = vrot.lane.b32.xlu0 %v917_v28, %s1813_s30  ;;  %v993_v28 = vstv %s2271_s8  ;;  %s1499_s8 = sld [smem:[#allocation8 + $0x27]] }
 0x167   : > { %v2229_v33 = vpop.permute.xlu2 %546  ;;  %v451_v34 = vpop.permute.xlu1 %450 }
 0x168   : > { %v511_v30 = vpop.permute.xlu0 %510  ;;  %v455_v38 = vadd.f32 %v451_v34, %v441_v17 }
 0x16a   : > { %v1631_v62 = vpop.eup %1630  ;;  %1634 = vtanh.f32 %v455_v38  ;;  %v575_v38 = vstv %s2288_s1  ;;  %s1506_s1 = sld [smem:[#allocation8 + $0x2d]] }
 0x16b   : > { %v458_v5 = vmul.f32 %v1631_v62, %v1962_v8  ;;  %v1633_v10 = vpop.eup %1632  ;;  %v576_v42 = vmul.f32 %v575_v38, %v1960_v7 }
 0x16c   : > { %v349_v26 = vmul.f32 %v1633_v10, %v1972_v13 }
 0x16d   : > { %920 = vrot.lane.b32.xlu2 %v916_v39, %s1813_s30  ;;  %886 = vrot.lane.b32.xlu1 %v882_v40, %s1813_s30  ;;  %v578_v43 = vadd.f32 %v576_v42, %v573_v36  ;;  %v1009_v42 = vmul.f32 %v1007_v41, %v1974_v14 }
 0x16e   : > { %978 = vrot.lane.b32.xlu0 %v974_v32, %s1813_s30 }
 0x16f   : > { %v2247_v47 = vpop.permute.xlu2 %586  ;;  %v491_v48 = vpop.permute.xlu1 %490 }
 0x170   : > { %v527_v46 = vpop.permute.xlu0 %526  ;;  %v496_v50 = vadd.f32 %v491_v48, %v482_v45  ;;  %v1635_v16 = vpop.eup %1634  ;;  %v1008_v48 = vmul.f32 %v1007_v41, %v1962_v8  ;;  %v699_v41 = vstv %s1495_s9  ;;  %s2473_s9 = sld [smem:[#allocation8 + $0x36]] }
 0x171   : > { %v459_v27 = vmul.f32 %v1635_v16, %v1974_v14 }
 0x172   : > { %v502_v52 = vadd.f32 %v500_v49, %v496_v50  ;;  %v994_v49 = vmul.f32 %v993_v28, %v1962_v8  ;;  %v1100_v50 = vmul.f32 %v1099_v29, %v1960_v7 }
 0x173   : > { %v2304_v34 = vadd.f32 %v459_v27, %v349_v26 }
 0x174   : > { %v516_v55 = vadd.f32 %v511_v30, %v502_v52  ;;  %v995_v30 = vmul.f32 %v993_v28, %v1974_v14  ;;  %v592_v52 = vadd.f32 %v2247_v47, %v578_v43 }
 0x175   : > { %966 = vrot.lane.b32.xlu2 %v961_v53, %s1812_s22  ;;  %908 = vrot.lane.b32.xlu1 %v903_v54, %s1812_s22 }
 0x176   : > { %1092 = vrot.lane.b32.xlu0 %v1087_v44, %s1812_s22  ;;  %v530_v60 = vadd.f32 %v525_v15, %v516_v55  ;;  %v2286_v15 = vadd.f32 %v458_v5, %v348_v6  ;;  %v1245_v5 = vstv %s2337_s4  ;;  %s2528_s4 = sld [smem:[#allocation9 + $0x8]] }
 0x177   : > { %v2267_v58 = vpop.permute.xlu2 %602  ;;  %v513_v63 = vpop.permute.xlu1 %512 }
 0x178   : > { %v559_v57 = vpop.permute.xlu0 %558  ;;  %v517_v1 = vadd.f32 %v513_v63, %v503_v59  ;;  %v536_v20 = vadd.f32 %v534_v11, %v530_v60  ;;  %v1119_v59 = vstv %s2319_s27  ;;  %v1225_v60 = vstv %s2322_s28  ;;  %s2431_s27 = sld [smem:[#allocation8 + $0x33]] }
 0x179   : > { %v1121_v47 = vmul.f32 %v1119_v59, %v1974_v14  ;;  %v1227_v63 = vmul.f32 %v1225_v60, %v1972_v13  ;;  %s2439_s28 = sld [smem:[#allocation8 + $0x3f]] }
 0x17a   : > { %v531_v35 = vadd.f32 %v527_v46, %v517_v1  ;;  %v577_v46 = vmul.f32 %v575_v38, %v1972_v13 }
 0x17c   : > { %v537_v12 = vadd.f32 %v535_v4, %v531_v35  ;;  %v579_v44 = vadd.f32 %v577_v46, %v573_v36  ;;  %v611_v4 = vmul.f32 %v609_v51, %v1974_v14 }
 0x17d   : > { %1090 = vrot.lane.b32.xlu2 %v1086_v3, %s1812_s22  ;;  %964 = vrot.lane.b32.xlu1 %v960_v9, %s1812_s22 }
 0x17e   : > { %1216 = vrot.lane.b32.xlu0 %v1212_v2, %s1812_s22  ;;  %v551_v21 = vadd.f32 %v2229_v33, %v537_v12  ;;  %v1101_v33 = vmul.f32 %v1099_v29, %v1972_v13  ;;  %v1120_v12 = vmul.f32 %v1119_v59, %v1962_v8 }
 0x17f   : > { %v2291_v18 = vpop.permute.xlu2 %634  ;;  %v545_v22 = vpop.permute.xlu1 %544 }
 0x180   : > { %v589_v17 = vpop.permute.xlu0 %588  ;;  %v550_v23 = vadd.f32 %v545_v22, %v536_v20  ;;  %v1226_v20 = vmul.f32 %v1225_v60, %v1960_v7  ;;  %v735_v60 = vstv %s1499_s8  ;;  %s2484_s8 = sld [smem:[#allocation8 + $0x50]] }
 0x181   : > { %v593_v25 = vadd.f32 %v589_v17, %v579_v44 }
 0x182   : > { %v564_v31 = vadd.f32 %v559_v57, %v550_v23 }
 0x183   : > { %v607_v1 = vadd.f32 %v2267_v58, %v593_v25  ;;  %v1246_v58 = vmul.f32 %v1245_v5, %v1962_v8  ;;  %v1027_v25 = vstv %s2389_s11  ;;  %s2481_s11 = sld [smem:[#allocation9 + $0x6]] }
 0x184   : > { %1636 = vtanh.f32 %v564_v31 }
 0x185   : > { %1106 = vrot.lane.b32.xlu2 %v1101_v33, %s1813_s30  ;;  %980 = vrot.lane.b32.xlu1 %v975_v37, %s1813_s30  ;;  %v613_v10 = vadd.f32 %v611_v4, %v607_v1  ;;  %v1133_v37 = vstv %s2361_s5  ;;  %v737_v4 = vmul.f32 %v735_v60, %v1974_v14  ;;  %s2451_s5 = sld [smem:[#allocation8 + $0x46]] }
 0x186   : > { %1000 = vrot.lane.b32.xlu0 %v995_v30, %s1812_s22  ;;  %v645_v30 = vmul.f32 %v643_v61, %v1991_v24  ;;  %v1134_v51 = vmul.f32 %v1133_v37, %v1962_v8  ;;  %v1028_v8 = vmul.f32 %v1027_v25, %v1982_v19 }
 0x187   : > { %v2315_v39 = vpop.permute.xlu2 %656  ;;  %v561_v40 = vpop.permute.xlu1 %560 }
 0x188   : > { %v621_v32 = vpop.permute.xlu0 %620  ;;  %v565_v45 = vadd.f32 %v561_v40, %v551_v21  ;;  %v644_v21 = vmul.f32 %v643_v61, %v1982_v19 }
 0x18a   : > { %v1637_v6 = vpop.eup %1636  ;;  %1638 = vtanh.f32 %v565_v45 }
 0x18b   : > { %v568_v17 = vmul.f32 %v1637_v6, %v1982_v19 }
 0x18d   : > { %998 = vrot.lane.b32.xlu2 %v994_v49, %s1812_s22  ;;  %1104 = vrot.lane.b32.xlu1 %v1100_v50, %s1813_s30  ;;  %v2371_v22 = vadd.f32 %v568_v17, %v2286_v15  ;;  %v1135_v15 = vmul.f32 %v1133_v37, %v1974_v14 }
 0x18e   : > { %1012 = vrot.lane.b32.xlu0 %v1008_v48, %s1813_s30  ;;  %v701_v48 = vstv %s1496_s7  ;;  %s2470_s7 = sld [smem:[#allocation8 + $0x4f]] }
 0x18f   : > { %v2335_v54 = vpop.permute.xlu2 %726  ;;  %v601_v55 = vpop.permute.xlu1 %600  ;;  %v702_v50 = vmul.f32 %v701_v48, %v1960_v7 }
 0x190   : > { %v637_v53 = vpop.permute.xlu0 %636  ;;  %v606_v57 = vadd.f32 %v601_v55, %v592_v52  ;;  %v1639_v23 = vpop.eup %1638  ;;  %v703_v52 = vmul.f32 %v701_v48, %v1972_v13 }
 0x191   : > { %v569_v33 = vmul.f32 %v1639_v23, %v1991_v24 }
 0x192   : > { %v612_v62 = vadd.f32 %v610_v56, %v606_v57  ;;  %v705_v57 = vadd.f32 %v703_v52, %v699_v41 }
 0x193   : > { %v2381_v40 = vadd.f32 %v569_v33, %v2304_v34  ;;  %v825_v33 = vstv %s1505_s20  ;;  %s2511_s20 = sld [smem:[#allocation8 + $0x42]] }
 0x194   : > { %v626_v2 = vadd.f32 %v621_v32, %v612_v62 }
 0x195   : > { %1232 = vrot.lane.b32.xlu2 %v1227_v63, %s1813_s30  ;;  %1218 = vrot.lane.b32.xlu1 %v1213_v0, %s1812_s22  ;;  %v2407_v0 = vld [vmem:[#allocation2 + $0x1] sm:$0xff] }
 0x196   : > { %1126 = vrot.lane.b32.xlu0 %v1121_v47, %s1812_s22  ;;  %v640_v16 = vadd.f32 %v2291_v18, %v626_v2  ;;  %v736_v1 = vmul.f32 %v2407_v0, %v735_v60 }
 0x197   : > { %v2353_v35 = vpop.permute.xlu2 %748  ;;  %v623_v9 = vpop.permute.xlu1 %622 }
 0x198   : > { %v669_v3 = vpop.permute.xlu0 %668  ;;  %v627_v11 = vadd.f32 %v623_v9, %v613_v10  ;;  %v646_v28 = vadd.f32 %v644_v21, %v640_v16  ;;  %v769_v10 = vstv %s1502_s10  ;;  %s2495_s10 = sld [smem:[#allocation8 + $0x39]] }
 0x199   : > { %v771_v16 = vmul.f32 %v769_v10, %v1991_v24  ;;  %v2419_v24 = vld [vmem:[#allocation2] sm:$0xff] }
 0x19a   : > { %v641_v26 = vadd.f32 %v637_v53, %v627_v11 }
 0x19c   : > { %v647_v32 = vadd.f32 %v645_v30, %v641_v26  ;;  %v827_v30 = vstv %s1506_s1  ;;  %s1541_s1 = sld [smem:[#allocation8 + $0x4d]] }
 0x19d   : > { %1124 = vrot.lane.b32.xlu2 %v1120_v12, %s1812_s22  ;;  %1230 = vrot.lane.b32.xlu1 %v1226_v20, %s1813_s30  ;;  %v770_v20 = vmul.f32 %v769_v10, %v1982_v19  ;;  %v828_v19 = vmul.f32 %v2419_v24, %v827_v30 }
 0x19e   : > { %1250 = vrot.lane.b32.xlu0 %v1246_v58, %s1812_s22  ;;  %v661_v46 = vadd.f32 %v2315_v39, %v647_v32  ;;  %v704_v39 = vadd.f32 %v702_v50, %v699_v41 }
 0x19f   : > { %v2374_v27 = vpop.permute.xlu2 %780  ;;  %v655_v29 = vpop.permute.xlu1 %654 }
 0x1a0   : > { %v713_v18 = vpop.permute.xlu0 %712  ;;  %v660_v31 = vadd.f32 %v655_v29, %v646_v28 }
 0x1a1   : > { %v718_v56 = vadd.f32 %v713_v18, %v704_v39  ;;  %v2441_v39 = vld [vmem:[#allocation2 + $0x9] sm:$0xff] }
 0x1a2   : > { %v674_v38 = vadd.f32 %v669_v3, %v660_v31 }
 0x1a3   : > { %v732_v13 = vadd.f32 %v2335_v54, %v718_v56 }
 0x1a4   : > { %1640 = vtanh.f32 %v674_v38 }
 0x1a5   : > { %1140 = vrot.lane.b32.xlu2 %v1135_v15, %s1813_s30  ;;  %1014 = vrot.lane.b32.xlu1 %v1009_v42, %s1813_s30  ;;  %v738_v3 = vadd.f32 %v736_v1, %v732_v13 }
 0x1a7   : > { %v797_v36 = vpop.permute.xlu2 %796  ;;  %v671_v49 = vpop.permute.xlu1 %670 }
 0x1a8   : > { %v729_v45 = vpop.permute.xlu0 %728  ;;  %v675_v34 = vadd.f32 %v671_v49, %v661_v46  ;;  %v861_v49 = vstv %s1509_s23  ;;  %s1534_s23 = sld [smem:[#allocation8 + $0x47]] }
 0x1aa   : > { %1642 = vtanh.f32 %v675_v34  ;;  %v1641_v43 = vpop.eup %1640 }
 0x1ad   : > { %680 = vrot.lane.b32.xlu2 %v1641_v43, %s1810_s26  ;;  %1138 = vrot.lane.b32.xlu1 %v1134_v51, %s1813_s30  ;;  %v2434_v51 = vld [vmem:[#allocation2 + $0xa] sm:$0xff] }
 0x1ae   : > { %v1029_v52 = vmul.f32 %v2434_v51, %v1027_v25  ;;  %v1041_v25 = vstv %s2429_s6  ;;  %s2557_s6 = sld [smem:[#allocation8 + $0x4b]] }
 0x1af   : > { %v2396_v53 = vpop.permute.xlu2 %840  ;;  %v715_v55 = vpop.permute.xlu1 %714 }
 0x1b0   : > { %v761_v44 = vpop.permute.xlu0 %760  ;;  %v1643_v7 = vpop.eup %1642  ;;  %v719_v59 = vadd.f32 %v715_v55, %v705_v57 }
 0x1b1   : > { %682 = vrot.lane.b32.xlu0 %v1643_v7, %s1810_s26 }
 0x1b2   : > { %v733_v62 = vadd.f32 %v729_v45, %v719_v59  ;;  %v830_v45 = vadd.f32 %v828_v19, %v825_v33  ;;  %v895_v59 = vstv %s2431_s27  ;;  %s2579_s27 = sld [smem:[#allocation8 + $0x3c]] }
 0x1b4   : > { %v739_v9 = vadd.f32 %v737_v4, %v733_v62 }
 0x1b5   : > { %1032 = vrot.lane.b32.xlu2 %v1028_v8, %s1812_s22 }
 0x1b6   : > { %v753_v11 = vadd.f32 %v2353_v35, %v739_v9 }
 0x1b7   : > { %v2405_v63 = vpop.permute.xlu2 %872  ;;  %v747_v2 = vpop.permute.xlu1 %746 }
 0x1b8   : > { %v783_v47 = vpop.permute.xlu0 %782  ;;  %v752_v6 = vadd.f32 %v747_v2, %v738_v3  ;;  %v1079_v2 = vstv %s2439_s28  ;;  %s2589_s28 = sld [smem:[#allocation8 + $0x45]] }
 0x1ba   : > { %v766_v58 = vadd.f32 %v761_v44, %v752_v6  ;;  %v863_v44 = vmul.f32 %v2441_v39, %v861_v49 }
 0x1bc   : > { %v772_v23 = vadd.f32 %v770_v20, %v766_v58  ;;  %v1077_v58 = vstv %s2446_s29  ;;  %s1814_s29 = smov 2  }
 0x1be   : > { %v786_v28 = vadd.f32 %v2374_v27, %v772_v23  ;;  %v2423_v27 = vld [vmem:[#allocation2 + $0x8] sm:$0xff] }
 0x1bf   : > { %v2411_v61 = vpop.permute.xlu2 %888  ;;  %v763_v12 = vpop.permute.xlu1 %762  ;;  %v829_v42 = vmul.f32 %v2423_v27, %v827_v30  ;;  %v1081_v6 = vmul.f32 %v2423_v27, %v1079_v2 }
 0x1c0   : > { %v853_v54 = vpop.permute.xlu0 %852  ;;  %v767_v17 = vadd.f32 %v763_v12, %v753_v11  ;;  %v1153_v11 = vstv %s2451_s5  ;;  %s2602_s5 = sld [smem:[#allocation8 + $0x4e]] }
 0x1c1   : > { %v831_v48 = vadd.f32 %v829_v42, %v825_v33 }
 0x1c2   : > { %v773_v21 = vadd.f32 %v771_v16, %v767_v17  ;;  %v1083_v16 = vadd.f32 %v1081_v6, %v1077_v58 }
 0x1c3   : > { %v845_v34 = vadd.f32 %v2396_v53, %v831_v48  ;;  %v862_v53 = vmul.f32 %v2407_v0, %v861_v49  ;;  %v987_v49 = vstv %s2495_s10 }
 0x1c4   : > { %v787_v26 = vadd.f32 %v783_v47, %v773_v21  ;;  %v2457_v47 = vld [vmem:[#allocation2 + $0x2] sm:$0xff] }
 0x1c5   : > { %v1042_v1 = vmul.f32 %v2457_v47, %v1041_v25  ;;  %v896_v3 = vmul.f32 %v2457_v47, %v895_v59 }
 0x1c6   : > { %v801_v14 = vadd.f32 %v797_v36, %v787_v26 }
 0x1c7   : > { %v2417_v29 = vpop.permute.xlu2 %920  ;;  %v795_v31 = vpop.permute.xlu1 %794 }
 0x1c8   : > { %v875_v18 = vpop.permute.xlu0 %874  ;;  %1644 = vtanh.f32 %v801_v14  ;;  %v800_v35 = vadd.f32 %v795_v31, %v786_v28 }
 0x1ca   : > { %1646 = vtanh.f32 %v800_v35  ;;  %v953_v35 = vstv %s2473_s9 }
 0x1ce   : > { %v1645_v37 = vpop.eup %1644 }
 0x1cf   : > { %808 = vrot.lane.b32.xlu1 %v1645_v37, %s1810_s26  ;;  %v839_v15 = vpop.permute.xlu1 %838  ;;  %v2426_v36 = vpop.permute.xlu2 %966  ;;  %v955_v37 = vmul.f32 %v2423_v27, %v953_v35 }
 0x1d0   : > { %v907_v38 = vpop.permute.xlu0 %906  ;;  %v1647_v32 = vpop.eup %1646  ;;  %v844_v46 = vadd.f32 %v839_v15, %v830_v45  ;;  %v1293_v45 = vstv %s2484_s8 }
 0x1d1   : > { %806 = vrot.lane.b32.xlu0 %v1647_v32, %s1810_s26  ;;  %v951_v32 = vstv %s2481_s11 }
 0x1d2   : > { %v858_v50 = vadd.f32 %v853_v54, %v844_v46  ;;  %v897_v54 = vmul.f32 %v2434_v51, %v895_v59  ;;  %v957_v42 = vadd.f32 %v955_v37, %v951_v32  ;;  %v1247_v46 = vmul.f32 %v2441_v39, %v1245_v5 }
 0x1d3   : > { %v1239_v37 = vstv %s2557_s6 }
 0x1d4   : > { %v864_v56 = vadd.f32 %v862_v53, %v858_v50  ;;  %v971_v48 = vadd.f32 %v2426_v36, %v957_v42  ;;  %v1295_v50 = vmul.f32 %v2434_v51, %v1293_v45  ;;  %v1240_v42 = vmul.f32 %v2407_v0, %v1239_v37 }
 0x1d6   : > { %v878_v13 = vadd.f32 %v2405_v63, %v864_v56 }
 0x1d7   : > { %v855_v41 = vpop.permute.xlu1 %854  ;;  %v2448_v57 = vpop.permute.xlu2 %1090 }
 0x1d8   : > { %v923_v43 = vpop.permute.xlu0 %922  ;;  %v859_v55 = vadd.f32 %v855_v41, %v845_v34  ;;  %v989_v41 = vmul.f32 %v2441_v39, %v987_v49 }
 0x1d9   : > { %1034 = vrot.lane.b32.xlu0 %v1029_v52, %s1812_s22 }
 0x1da   : > { %v865_v7 = vadd.f32 %v863_v44, %v859_v55  ;;  %v1259_v44 = vstv %s1541_s1 }
 0x1db   : > { %v1261_v36 = vmul.f32 %v2441_v39, %v1259_v44  ;;  %v1260_v59 = vmul.f32 %v2407_v0, %v1259_v44 }
 0x1dc   : > { %v879_v8 = vadd.f32 %v875_v18, %v865_v7 }
 0x1de   : > { %v893_v10 = vadd.f32 %v2411_v61, %v879_v8  ;;  %v1155_v61 = vmul.f32 %v2434_v51, %v1153_v11  ;;  %v1113_v8 = vstv %s2511_s20 }
 0x1df   : > { %v887_v62 = vpop.permute.xlu1 %886  ;;  %v1107_v12 = vpop.permute.xlu2 %1106 }
 0x1e0   : > { %v2454_v60 = vpop.permute.xlu0 %978  ;;  %v892_v4 = vadd.f32 %v887_v62, %v878_v13  ;;  %v899_v21 = vadd.f32 %v897_v54, %v893_v10 }
 0x1e1   : > { %1046 = vrot.lane.b32.xlu0 %v1042_v1, %s1813_s30  ;;  %v1114_v1 = vmul.f32 %v2407_v0, %v1113_v8 }
 0x1e2   : > { %v898_v9 = vadd.f32 %v896_v3, %v892_v4  ;;  %v1154_v4 = vmul.f32 %v2457_v47, %v1153_v11 }
 0x1e4   : > { %v912_v63 = vadd.f32 %v907_v38, %v898_v9 }
 0x1e6   : > { %v926_v17 = vadd.f32 %v2417_v29, %v912_v63  ;;  %v1279_v29 = vstv %s2470_s7  ;;  %v1043_v63 = vmul.f32 %v2434_v51, %v1041_v25  ;;  %v1294_v25 = vmul.f32 %v2457_v47, %v1293_v45 }
 0x1e7   : > { %v909_v26 = vpop.permute.xlu1 %908  ;;  %v2487_v30 = vpop.permute.xlu2 %998  ;;  %v1280_v33 = vmul.f32 %v2457_v47, %v1279_v29 }
 0x1e8   : > { %v1093_v20 = vpop.permute.xlu0 %1092  ;;  %1648 = vtanh.f32 %v926_v17  ;;  %v913_v14 = vadd.f32 %v909_v26, %v899_v21 }
 0x1e9   : > { %v1097_v23 = vadd.f32 %v1093_v20, %v1083_v16  ;;  %1160 = vrot.lane.b32.xlu0 %v1155_v61, %s1812_s22  ;;  %v1281_v61 = vmul.f32 %v2434_v51, %v1279_v29  ;;  %v954_v29 = vmul.f32 %v2419_v24, %v953_v35 }
 0x1ea   : > { %v927_v28 = vadd.f32 %v923_v43, %v913_v14  ;;  %v1080_v43 = vmul.f32 %v2419_v24, %v1079_v2 }
 0x1eb   : > { %v2478_v18 = vadd.f32 %v1107_v12, %v1097_v23  ;;  %v1167_v12 = vstv %s1534_s23 }
 0x1ec   : > { %1650 = vtanh.f32 %v927_v28  ;;  %v1082_v7 = vadd.f32 %v1080_v43, %v1077_v58  ;;  %v1169_v11 = vmul.f32 %v2434_v51, %v1167_v12  ;;  %v1168_v21 = vmul.f32 %v2457_v47, %v1167_v12 }
 0x1ee   : > { %v1649_v31 = vpop.eup %1648  ;;  %v1096_v13 = vadd.f32 %v2448_v57, %v1082_v7  ;;  %v1203_v57 = vstv %s2528_s4  ;;  %v1021_v7 = vstv %s2579_s27  ;;  %s1750_s4 = scalar_lea.hbm %s2690_s3, 32 }
 0x1ef   : > { %932 = vrot.lane.b32.xlu1 %v1649_v31, %s1810_s26  ;;  %v2490_v19 = vpop.permute.xlu1 %964  ;;  %v1233_v5 = vpop.permute.xlu2 %1232 }
 0x1f0   : > { %v2500_v38 = vpop.permute.xlu0 %1216 }
 0x1f1   : > { %1284 = vrot.lane.b32.xlu0 %v1280_v33, %s1812_s22 }
 0x1f2   : > { %v1651_v15 = vpop.eup %1650 }
 0x1f3   : > { %934 = vrot.lane.b32.xlu2 %v1651_v15, %s1810_s26  ;;  %s2521_s26 = sld [smem:[#allocation8 + $0x48]] }
 0x1f7   : > { %1252 = vrot.lane.b32.xlu1 %v1247_v46, %s1812_s22  ;;  %v981_v34 = vpop.permute.xlu1 %980  ;;  %v1125_v10 = vpop.permute.xlu2 %1124 }
 0x1f8   : > { %v985_v52 = vadd.f32 %v981_v34, %v971_v48  ;;  %v1001_v53 = vpop.permute.xlu0 %1000 }
 0x1f9   : > { %1300 = vrot.lane.b32.xlu0 %v1295_v50, %s1813_s30  ;;  %v1205_v3 = vstv %s2521_s26 }
 0x1fa   : > { %v991_v55 = vadd.f32 %v989_v41, %v985_v52  ;;  %v1207_v9 = vmul.f32 %v2423_v27, %v1205_v3  ;;  %v1206_v26 = vmul.f32 %v2419_v24, %v1205_v3  ;;  %v956_v41 = vadd.f32 %v954_v29, %v951_v32 }
 0x1fb   : > { %1266 = vrot.lane.b32.xlu2 %v1261_v36, %s1813_s30 }
 0x1fc   : > { %v2526_v56 = vadd.f32 %v1001_v53, %v991_v55  ;;  %v1209_v54 = vadd.f32 %v1207_v9, %v1203_v57  ;;  %v1208_v14 = vadd.f32 %v1206_v26, %v1203_v57  ;;  %v1147_v57 = vstv %s2589_s28 }
 0x1fd   : > { %v1149_v12 = vmul.f32 %v2434_v51, %v1147_v57 }
 0x1fe   : > { %v1222_v33 = vadd.f32 %v2500_v38, %v1208_v14  ;;  %v970_v38 = vadd.f32 %v2490_v19, %v956_v41  ;;  %v1273_v14 = vstv %s2602_s5 }
 0x1ff   : > { %1264 = vrot.lane.b32.xlu1 %v1260_v59, %s1813_s30  ;;  %v1105_v62 = vpop.permute.xlu1 %1104  ;;  %v1141_v34 = vpop.permute.xlu2 %1140 }
 0x200   : > { %v1110_v2 = vadd.f32 %v1105_v62, %v1096_v13  ;;  %v1013_v23 = vpop.permute.xlu0 %1012  ;;  %v984_v52 = vadd.f32 %v2454_v60, %v970_v38  ;;  %v1022_v60 = vmul.f32 %v2457_v47, %v1021_v7 }
 0x202   : > { %v1116_v6 = vadd.f32 %v1114_v1, %v1110_v2 }
 0x203   : > { %1158 = vrot.lane.b32.xlu2 %v1154_v4, %s1812_s22 }
 0x204   : > { %v2543_v58 = vadd.f32 %v1125_v10, %v1116_v6 }
 0x207   : > { %1048 = vrot.lane.b32.xlu1 %v1043_v63, %s1813_s30  ;;  %v1219_v16 = vpop.permute.xlu1 %1218  ;;  %v681_v50 = vpop.permute.xlu2 %680 }
 0x208   : > { %v1223_v17 = vadd.f32 %v1219_v16, %v1209_v54  ;;  %v1127_v28 = vpop.permute.xlu0 %1126 }
 0x20a   : > { %v2551_v20 = vadd.f32 %v1233_v5, %v1223_v17  ;;  %v988_v5 = vmul.f32 %v2407_v0, %v987_v49  ;;  %v1115_v49 = vmul.f32 %v2441_v39, %v1113_v8 }
 0x20b   : > { %1174 = vrot.lane.b32.xlu2 %v1169_v11, %s1813_s30 }
 0x20c   : > { %v990_v35 = vadd.f32 %v988_v5, %v984_v52  ;;  %v1148_v52 = vmul.f32 %v2457_v47, %v1147_v57 }
 0x20e   : > { %v1004_v53 = vadd.f32 %v2487_v30, %v990_v35  ;;  %v1117_v30 = vadd.f32 %v1115_v49, %v2478_v18 }
 0x20f   : > { %1172 = vrot.lane.b32.xlu1 %v1168_v21, %s1813_s30  ;;  %v1231_v31 = vpop.permute.xlu1 %1230  ;;  %v1033_v36 = vpop.permute.xlu2 %1032 }
 0x210   : > { %v1236_v15 = vadd.f32 %v1231_v31, %v1222_v33  ;;  %v1251_v46 = vpop.permute.xlu0 %1250  ;;  %v1018_v59 = vadd.f32 %v1013_v23, %v1004_v53  ;;  %v1131_v9 = vadd.f32 %v1127_v28, %v1117_v30  ;;  %v1023_v31 = vmul.f32 %v2434_v51, %v1021_v7 }
 0x211   : > { %v686_v33 = vmul.f32 %v2419_v24, %v681_v50 }
 0x212   : > { %v1242_v45 = vadd.f32 %v1240_v42, %v1236_v15  ;;  %v1024_v13 = vadd.f32 %v1022_v60, %v1018_v59  ;;  %v1145_v54 = vadd.f32 %v1141_v34, %v1131_v9  ;;  %v1274_v15 = vmul.f32 %v2457_v47, %v1273_v14 }
 0x213   : > { %1298 = vrot.lane.b32.xlu2 %v1294_v25, %s1813_s30 }
 0x214   : > { %v1256_v48 = vadd.f32 %v1251_v46, %v1242_v45  ;;  %v1038_v1 = vadd.f32 %v1033_v36, %v1024_v13  ;;  %v1151_v11 = vadd.f32 %v1149_v12, %v1145_v54 }
 0x217   : > { %1286 = vrot.lane.b32.xlu1 %v1281_v61, %s1812_s22  ;;  %v1015_v55 = vpop.permute.xlu1 %1014 }
 0x218   : > { %v1019_v61 = vadd.f32 %v1015_v55, %v2526_v56 }
 0x21a   : > { %v1025_v42 = vadd.f32 %v1023_v31, %v1019_v61 }
 0x21f   : > { %v1139_v62 = vpop.permute.xlu1 %1138 }
 0x220   : > { %v1144_v29 = vadd.f32 %v1139_v62, %v2543_v58 }
 0x222   : > { %v1150_v5 = vadd.f32 %v1148_v52, %v1144_v29 }
 0x223   : > { %v2573_v43 = vpop.permute.xlu0 %682 }
 0x224   : > { %v687_v49 = vmul.f32 %v2423_v27, %v2573_v43 }
 0x241   : > { %v2595_v6 = vpop.permute.xlu1 %808 }
 0x242   : > { %v813_v9 = vmul.f32 %v2441_v39, %v2595_v6 }
 0x243   : > { %v2581_v44 = vpop.permute.xlu0 %806 }
 0x244   : > { %v812_v30 = vmul.f32 %v2407_v0, %v2581_v44 }
 0x24b   : > { %v1035_v32 = vpop.permute.xlu0 %1034 }
 0x24c   : > { %v1039_v46 = vadd.f32 %v1035_v32, %v1025_v42 }
 0x24d   : > { %v935_v19 = vpop.permute.xlu2 %934 }
 0x24e   : > { %v939_v50 = vmul.f32 %v2434_v51, %v935_v19 }
 0x253   : > { %v1047_v2 = vpop.permute.xlu0 %1046 }
 0x254   : > { %v1052_v3 = vadd.f32 %v1047_v2, %v1038_v1 }
 0x255   : > { %v1267_v4 = vpop.permute.xlu2 %1266 }
 0x256   : > { %1652 = vtanh.f32 %v1052_v3 }
 0x25b   : > { %v1161_v16 = vpop.permute.xlu0 %1160 }
 0x25c   : > { %v1653_v10 = vpop.eup %1652  ;;  %v1165_v8 = vadd.f32 %v1161_v16, %v1151_v11 }
 0x25d   : > { %v1159_v63 = vpop.permute.xlu2 %1158  ;;  %1058 = vrot.lane.b32.xlu1 %v1653_v10, %s1814_s29 }
 0x25e   : > { %v1164_v53 = vadd.f32 %v1159_v63, %v1150_v5 }
 0x261   : > { %v2600_v17 = vpop.permute.xlu1 %932 }
 0x262   : > { %v938_v10 = vmul.f32 %v2457_v47, %v2600_v17 }
 0x263   : > { %v1285_v41 = vpop.permute.xlu0 %1284 }
 0x265   : > { %v1175_v21 = vpop.permute.xlu2 %1174 }
 0x266   : > { %v1179_v23 = vadd.f32 %v1175_v21, %v1165_v8 }
 0x268   : > { %1654 = vtanh.f32 %v1179_v23 }
 0x269   : > { %v1253_v18 = vpop.permute.xlu1 %1252 }
 0x26b   : > { %v1301_v2 = vpop.permute.xlu0 %1300 }
 0x26d   : > { %v1299_v35 = vpop.permute.xlu2 %1298 }
 0x26e   : > { %v1655_v25 = vpop.eup %1654 }
 0x26f   : > { %1186 = vrot.lane.b32.xlu1 %v1655_v25, %s1814_s29 }
 0x271   : > { %v1265_v26 = vpop.permute.xlu1 %1264 }
 0x272   : > { %v1270_v28 = vadd.f32 %v1265_v26, %v1256_v48  ;;  %v1241_v48 = vmul.f32 %v2441_v39, %v1239_v37  ;;  %v1275_v37 = vmul.f32 %v2434_v51, %v1273_v14 }
 0x274   : > { %v1276_v45 = vadd.f32 %v1274_v15, %v1270_v28  ;;  %v1243_v36 = vadd.f32 %v1241_v48, %v2551_v20 }
 0x276   : > { %v1290_v56 = vadd.f32 %v1285_v41, %v1276_v45  ;;  %v1257_v58 = vadd.f32 %v1253_v18, %v1243_v36 }
 0x277   : > { %690 = vrot.lane.b32.xlu1 %v686_v33, %s1812_s22 }
 0x278   : > { %v1304_v55 = vadd.f32 %v1299_v35, %v1290_v56  ;;  %v1271_v60 = vadd.f32 %v1267_v4, %v1257_v58 }
 0x279   : > { %v1049_v34 = vpop.permute.xlu1 %1048 }
 0x27a   : > { %v1053_v38 = vadd.f32 %v1049_v34, %v1039_v46  ;;  %v1277_v19 = vadd.f32 %v1275_v37, %v1271_v60 }
 0x27c   : > { %1656 = vtanh.f32 %v1053_v38 }
 0x27d   : > { %1658 = vtanh.f32 %v1304_v55 }
 0x27f   : > { %944 = vrot.lane.b32.xlu1 %v939_v50, %s1812_s22 }
 0x281   : > { %v1173_v7 = vpop.permute.xlu1 %1172 }
 0x282   : > { %v1657_v32 = vpop.eup %1656  ;;  %v1178_v59 = vadd.f32 %v1173_v7, %v1164_v53 }
 0x283   : > { %1060 = vrot.lane.b32.xlu2 %v1657_v32, %s1814_s29  ;;  %v1659_v13 = vpop.eup %1658 }
 0x284   : > { %1660 = vtanh.f32 %v1178_v59 }
 0x289   : > { %v1287_v62 = vpop.permute.xlu1 %1286 }
 0x28a   : > { %v1661_v20 = vpop.eup %1660  ;;  %v1291_v1 = vadd.f32 %v1287_v62, %v1277_v19 }
 0x28b   : > { %1310 = vrot.lane.b32.xlu2 %v1659_v13, %s1814_s29  ;;  %1184 = vrot.lane.b32.xlu0 %v1661_v20, %s1814_s29 }
 0x28c   : > { %v1305_v3 = vadd.f32 %v1301_v2, %v1291_v1 }
 0x28e   : > { %1662 = vtanh.f32 %v1305_v3 }
 0x293   : > { %692 = vrot.lane.b32.xlu2 %v687_v49, %s1812_s22 }
 0x294   : > { %v1663_v4 = vpop.eup %1662 }
 0x295   : > { %1312 = vrot.lane.b32.xlu0 %v1663_v4, %s1814_s29 }
 0x29b   : > { %816 = vrot.lane.b32.xlu2 %v812_v30, %s1812_s22 }
 0x29d   : > { %818 = vrot.lane.b32.xlu0 %v813_v9, %s1812_s22 }
 0x2a5   : > { %942 = vrot.lane.b32.xlu0 %v938_v10, %s1812_s22  ;;  %s1551_s22 = sshll.u32 %s1858_s16, 4  ;;  %s1332_s16 = scalar_lea.sflag [#allocation5], %s1937_s17 }
 0x2a6   : > { %s1343_s11 = scalar_lea.hbm %s2690_s3, %s1551_s22 }
 0x2a7   : > { %s1346_s10 = sshll.u32 %s1343_s11, 4  ;;  %s1347_s10 = int_to_ptr.hbm [resolvable:$true] %s1346_s10 }
 0x2a8   : > { %s1744_s1 = sshra.s32 %s1347_s10, 4  ;;  %s1745_s1 = int_to_ptr.hbm [resolvable:$true] %s1744_s1 }
 0x2a9   : > { %p1751_p0 = scmp.lt.s32.totalorder %s1745_s1, %s2690_s3 }
 0x2cf   : > { %v1059_v43 = vpop.permute.xlu1 %1058 }
 0x2d0   : > { %v1064_v57 = vmul.f32 %v2419_v24, %v1059_v43 }
 0x2d2   : > { %1068 = vrot.lane.b32.xlu2 %v1064_v57, %s1813_s30 }
 0x2dd   : > { %v1061_v63 = vpop.permute.xlu2 %1060 }
 0x2de   : > { %v1065_v44 = vmul.f32 %v2423_v27, %v1061_v63 }
 0x2e0   : > { %1070 = vrot.lane.b32.xlu0 %v1065_v44, %s1813_s30 }
 0x2e1   : > { %v1187_v6 = vpop.permute.xlu1 %1186 }
 0x2e2   : > { %v1191_v54 = vmul.f32 %v2441_v39, %v1187_v6 }
 0x2e4   : > { %1196 = vrot.lane.b32.xlu2 %v1191_v54, %s1813_s30 }
 0x2e5   : > { %v1311_v12 = vpop.permute.xlu2 %1310 }
 0x2e6   : > { %v1316_v16 = vmul.f32 %v2457_v47, %v1311_v12 }
 0x2e8   : > { %1320 = vrot.lane.b32.xlu0 %v1316_v16, %s1813_s30 }
 0x2e9   : > { %v691_v39 = vpop.permute.xlu1 %690 }
 0x2ea   : > { %v696_v26 = vadd.f32 %v691_v39, %v2371_v22 }
 0x2ed   : > { %v693_v21 = vpop.permute.xlu2 %692 }
 0x2ee   : > { %v697_v14 = vadd.f32 %v693_v21, %v2381_v40 }
 0x2f1   : > { %v945_v25 = vpop.permute.xlu1 %944 }
 0x2f5   : > { %v817_v18 = vpop.permute.xlu2 %816 }
 0x2f6   : > { %v822_v61 = vadd.f32 %v817_v18, %v696_v26 }
 0x2fd   : > { %v1185_v17 = vpop.permute.xlu0 %1184 }
 0x2fe   : > { %v1190_v24 = vmul.f32 %v2407_v0, %v1185_v17 }
 0x300   : > { %1194 = vrot.lane.b32.xlu1 %v1190_v24, %s1813_s30 }
 0x307   : > { %v1313_v11 = vpop.permute.xlu0 %1312 }
 0x308   : > { %v1317_v27 = vmul.f32 %v2434_v51, %v1313_v11 }
 0x30a   : > { %1322 = vrot.lane.b32.xlu1 %v1317_v27, %s1813_s30  ;;  %s217_s30 = scalar_lea.vmem [#allocation10], %s1453_s19  ;;  %s1746_s19 = scalar_lea.hbm %s1745_s1, 16 }
 0x30b   : > { %s1344_s8 = sshll.u32 %s217_s30, 4  ;;  %p1747_p4 = scmp.ne.s32.totalorder %s1745_s1, %s1746_s19  ;;  %s1345_s8 = int_to_ptr.vmem [resolvable:$true] %s1344_s8 }
 0x30c   : > { %p1752_p7 = scmp.lt.s32.totalorder %s1750_s4, %s1746_s19 }
 0x30d   : > { %p1748_p6 = pnand %p1747_p4, %p1889_p11 }
 0x30e   : > { %p1753_p5 = por %p1752_p7, %p1751_p0 }
 0x30f   : > { %v819_v8 = vpop.permute.xlu0 %818  ;;  %p1749_p13 = pneg %p1748_p6 }
 0x310   : > { %v823_v31 = vadd.f32 %v819_v8, %v697_v14 }
 0x311   : > { %p1754_p8 = pnand %p1753_p5, %p1749_p13 }
 0x312   : > { %v949_v45 = vadd.f32 %v945_v25, %v823_v31 }
 0x317   : > { %v943_v23 = vpop.permute.xlu0 %942 }
 0x318   : > { %v948_v28 = vadd.f32 %v943_v23, %v822_v61 }
 0x32c   : > { %v1069_v0 = vpop.permute.xlu2 %1068 }
 0x32d   : > { %v1074_v51 = vadd.f32 %v1069_v0, %v948_v28 }
 0x33e   : > { %v1197_v22 = vpop.permute.xlu2 %1196 }
 0x352   : > { %v1071_v47 = vpop.permute.xlu0 %1070 }
 0x353   : > { %v1075_v34 = vadd.f32 %v1071_v47, %v949_v45 }
 0x355   : > { %v1201_v40 = vadd.f32 %v1197_v22, %v1075_v34 }
 0x35a   : > { %v1321_v42 = vpop.permute.xlu0 %1320 }
 0x372   : > { %v1195_v33 = vpop.permute.xlu1 %1194 }
 0x373   : > { %v1200_v15 = vadd.f32 %v1195_v33, %v1074_v51 }
 0x375   : > { %v1326_v46 = vadd.f32 %v1321_v42, %v1200_v15 }
 0x377   : > { %1329 = vst.msk [vmem:[%s217_s30] sm:$0xff] %vm1328_vm3, %v1326_v46 }
 0x37c   : > { %v1323_v29 = vpop.permute.xlu1 %1322 }
 0x37d   : > { %v1327_v41 = vadd.f32 %v1323_v29, %v1201_v40 }
 0x37f   : > { %1330 = vst.msk [vmem:[%s217_s30 + $0x8] sm:$0xff] %vm1328_vm3, %v1327_v41 }
 0x380   : > { %1757 = shalt.err (!%p1754_p8)
}
 0x381   : > { %s1815_s17 = smov 128   ;;  %s1816_s27 = smov 8  }
 0x382   : > { %1562 = dma.vmem_to_hbm [thread:$0]  (%p1889_p11), %s1345_s8, 256, %s1347_s10, %s1332_s16, %s1815_s17, %s1815_s17, %s1816_s27  }
 0x383 PF: > { %s1361_s28 = sand.u32 1, %s1792_s12   ;;  %p2699_p9 = scmp.ge.s32.totalorder %s1804_s15, 2 }
 0x384   : > { %s1362_s29 = scalar_lea.sflag [#allocation5], %s1361_s28 }
 0x385   : > { %p1576_p10 = pnand %p2699_p9, %p1893_p12 }
 0x387   : > { %p1577_p1 = pneg %p1576_p10 }
 0x389   : > { %1787 = dma.done.wait (%p1577_p1), %s1362_s29, 256  }
 0x38a   : > { %1789 = vsyncadd (%p1577_p1), %s1362_s29, 4294967040  ;;  %p18_p2 = scmp.ge.s32.totalorder %s1862_s18, 4   ;;  %s2700_s12 = smov %s1796_s13 }
 0x38b   : > { %s2701_s13 = smov %s1800_s14  ;;  %s2702_s14 = smov %s1874_s21 }
 0x38c   : > { %s2703_s15 = smov %s1862_s18  ;;  %20 = sbr.rel (!%p18_p2) target bundleno = 9 (0x9), region = 87 }
 0x391   :  { %1368 = vsyncpa [#allocation4], 1 }
 0x392   :  { %1370 = vsyncpa [#allocation4 + $0x1], 1 }
 0x393   :  { %1371 = vsyncpa [#allocation5], 1 }
 0x394   :  { %1373 = vsyncpa [#allocation5 + $0x1], 1 }
 0x395   :  { %1374 = vsyncpa [#allocation6], 1 }
 0x396   :  { %1376 = vsyncpa [#allocation6 + $0x1], 1 }
 0x397   :  { %1377 = vsyncpa [#allocation7], 1 }
 0x398   :  { %1379 = vsyncpa [#allocation7 + $0x1], 1 }

</bundles_post_ra>
